<compile_context>
chip_gen: v5e
topology: v5e:2x2
jax: 0.10.0
libtpu: 0.0.40
codegen_flags: <defaults>
</compile_context>

<pallas_src>
import functools

import numpy as np
import jax
import jax.numpy as jnp
from jax.experimental import pallas as pl
from jax.experimental.pallas import tpu as pltpu

H_BAR = 1.054571817e-34
EPS_0 = 8.854187817e-12
PHI = 1.618033988749895


def _r8(n):
    return ((n + 7) // 8) * 8


def _wslab_layout(H):
    """Row offsets (8-aligned) of every block inside the packed weight slab."""
    rows = {}
    rows["wh0"] = 0                         # (H, 4H)  layer-0 recurrent [r|z|n|0]
    rows["w1"] = _r8(H)                     # (2H, 4H) layer-1 fused [r|z|n_i|n_h]
    rows["bias"] = rows["w1"] + _r8(2 * H)  # (8, 4H)  all biases / LN affine
    rows["head"] = rows["bias"] + 8         # (H, 4H)  [wm1 | wm2 | wg1]
    rows["wg2"] = rows["head"] + _r8(H)     # (2H, H)  gamma_network output proj
    total = rows["wg2"] + _r8(2 * H)
    return rows, total


# ----------------------------------------------------------------------------
# Kernel
# ----------------------------------------------------------------------------

def _temporal_wave_kernel(x_ref, p_ref, w_ref, gf_ref, *, wave_dim, n_timesteps):
    H, T = wave_dim, n_timesteps
    x = x_ref[...]                               # (B, input_dim)
    B, in_dim = x.shape
    TH = T * H
    rows, _ = _wslab_layout(H)

    dot = lambda a, b: jnp.dot(a, b, preferred_element_type=jnp.float32)

    # ---- static sub-views of the two packed slabs (8-row / 32-lane aligned) --
    A0 = p_ref[0:in_dim, :]                      # (in, 3*T*H)
    c0 = p_ref[in_dim:in_dim + 1, :]             # (1,  3*T*H)

    wh0 = w_ref[rows["wh0"]:rows["wh0"] + H, :]          # (H, 4H)
    W1 = w_ref[rows["w1"]:rows["w1"] + 2 * H, :]         # (2H, 4H)
    bias = w_ref[rows["bias"]:rows["bias"] + 8, :]       # (8, 4H)
    b1 = bias[0:1, :]                                    # (1, 4H)
    bh0n = bias[1:2, 0:H]
    bm1 = bias[2:3, 0:H]
    bm2 = bias[2:3, H:2 * H]
    lng = bias[2:3, 2 * H:3 * H]
    lnb = bias[2:3, 3 * H:4 * H]
    bg1 = bias[3:4, 0:2 * H]
    bg2 = bias[3:4, 2 * H:3 * H]
    rh = rows["head"]
    wm1 = w_ref[rh:rh + H, 0:H]
    wm2 = w_ref[rh:rh + H, H:2 * H]
    wg1 = w_ref[rh:rh + H, 2 * H:4 * H]
    rg = rows["wg2"]
    wg2 = w_ref[rg:rg + 2 * H, 0:H]

    # ---- prologue: conv(center tap) + repeat/view + GRU layer-0 input path
    #      for all gates & timesteps, pre-folded into ONE lane-dense matmul.
    gi0 = dot(x, A0) + c0                        # (B, 3*T*H)

    h0 = jnp.zeros((B, H), jnp.float32)
    h1 = jnp.zeros((B, H), jnp.float32)
    h1_steps = []

    # ---- sequential recurrence (irreducible); static unroll, T is small.
    # Per step: 2 MXU pushes total (layer-0 gh, fused layer-1), gates pulled out
    # with static lane slices.
    for t in range(T):
        s = t * H

        # GRU layer 0 (PyTorch gate order [r, z, n]; b_hn stays inside r*(.)).
        gh0 = dot(h0, wh0)                                            # (B, 4H)
        r0 = jax.nn.sigmoid(gi0[:, s:s + H] + gh0[:, 0:H])
        z0 = jax.nn.sigmoid(gi0[:, TH + s:TH + s + H] + gh0[:, H:2 * H])
        n0 = jnp.tanh(gi0[:, 2 * TH + s:2 * TH + s + H]
                      + r0 * (gh0[:, 2 * H:3 * H] + bh0n))
        h0 = (1.0 - z0) * n0 + z0 * h0

        # GRU layer 1: single block-structured matmul on concat([h0, h1]).
        g1 = dot(jnp.concatenate([h0, h1], axis=1), W1) + b1          # (B, 4H)
        r1 = jax.nn.sigmoid(g1[:, 0:H])
        z1 = jax.nn.sigmoid(g1[:, H:2 * H])
        n1 = jnp.tanh(g1[:, 2 * H:3 * H] + r1 * g1[:, 3 * H:4 * H])
        h1 = (1.0 - z1) * n1 + z1 * h1

        h1_steps.append(h1)                       # stays in vregs

    # ---- hoisted head: one pass over the (T*B, H) slab of h1 states.
    hs = jnp.concatenate(h1_steps, axis=0)        # (T*B, H), t-major rows

    # wavelength_modulation: Linear -> LayerNorm -> Tanh -> Linear
    y = dot(hs, wm1) + bm1
    mu = jnp.mean(y, axis=-1, keepdims=True)
    var = jnp.mean((y - mu) ** 2, axis=-1, keepdims=True)
    y = (y - mu) * jax.lax.rsqrt(var + 1e-5) * lng + lnb
    y = jnp.tanh(y)
    y = dot(y, wm2) + bm2

    # gamma_network: Linear -> ReLU -> Linear
    u = jnp.maximum(dot(y, wg1) + bg1, 0.0)
    gf_ref[...] = dot(u, wg2) + bg2               # (T*B, H)


# ----------------------------------------------------------------------------
# Parameters: canonical (PyTorch-layout) synthetic params + kernel-ready packed
# slabs (transposed, gate-fused, layer-0 input path pre-folded over time).
# ----------------------------------------------------------------------------

def make_canonical_params(input_dim, wave_dim, n_timesteps, seed=42):
    H = wave_dim
    rng = np.random.default_rng(seed)

    def w(shape, fan_in):
        return rng.normal(0.0, 1.0 / np.sqrt(fan_in), shape).astype(np.float32)

    def b(shape):
        return rng.normal(0.0, 0.02, shape).astype(np.float32)

    p = {}
    p["conv_w"] = w((H, input_dim, 3), 3 * input_dim)   # Conv1d(in, H, k=3, pad=1)
    p["conv_b"] = b((H,))
    for l in (0, 1):                                     # GRU, 2 layers, torch layout
        p[f"wih{l}"] = w((3 * H, H), H)
        p[f"whh{l}"] = w((3 * H, H), H)
        p[f"bih{l}"] = b((3 * H,))
        p[f"bhh{l}"] = b((3 * H,))
    p["wm1"] = w((H, H), H);         p["bm1"] = b((H,))
    p["lng"] = np.ones((H,), np.float32)                 # LayerNorm default affine
    p["lnb"] = np.zeros((H,), np.float32)
    p["wm2"] = w((H, H), H);         p["bm2"] = b((H,))
    p["wg1"] = w((2 * H, H), H);     p["bg1"] = b((2 * H,))
    p["wg2"] = w((H, 2 * H), 2 * H); p["bg2"] = b((H,))
    return p


def prepare_kernel_params(c, input_dim, wave_dim, n_timesteps):
    """One-time host-side folding + packing into two aligned VMEM slabs."""
    H, T = wave_dim, n_timesteps

    def gate(mat, vec, idx):
        return mat[idx * H:(idx + 1) * H, :], vec[idx * H:(idx + 1) * H]

    # Conv1d(k=3, pad=1) on a length-1 signal == center-tap matmul.
    wc_t = np.ascontiguousarray(c["conv_w"][:, :, 1].T).astype(np.float32)  # (in, H)
    bc = c["conv_b"][None, :].astype(np.float32)                            # (1, H)

    # repeat(1,1,T).view(B,T,H):  x_t = gradient_field @ M_t,
    #   M_t[i, j] = 1  iff  i == (t*H + j) // T
    cols = np.arange(H)
    Ms = []
    for t in range(T):
        M_t = np.zeros((H, H), np.float32)
        M_t[(t * H + cols) // T, cols] = 1.0
        Ms.append(M_t)

    # --- GRU layer 0 input path: fold x -> conv -> M_t -> W_i{r,z,n} per gate,
    #     then concatenate gates -> one (in, 3*T*H) matrix + (1, 3*T*H) bias.
    A_blocks, C_blocks = [], []
    for gname, gi in (("r", 0), ("z", 1), ("n", 2)):
        wih_g, bih_g = gate(c["wih0"], c["bih0"], gi)
        whh_g, bhh_g = gate(c["whh0"], c["bhh0"], gi)
        Wi = wih_g.T                                     # (H, H): x_t @ Wi
        a_t, c_t = [], []
        for M_t in Ms:
            MW = M_t @ Wi                                # (H, H)
            a_t.append(wc_t @ MW)                        # (in, H)
            cst = bc @ MW + bih_g[None, :]
            if gname != "n":                             # b_hr / b_hz fold too
                cst = cst + bhh_g[None, :]
            c_t.append(cst)
        A_blocks.append(np.concatenate(a_t, axis=1))     # (in, T*H)
        C_blocks.append(np.concatenate(c_t, axis=1))     # (1, T*H)
    A0 = np.concatenate(A_blocks, axis=1)                # (in, 3*T*H)
    C0 = np.concatenate(C_blocks, axis=1)                # (1, 3*T*H)

    # Prologue slab P: rows [A0; C0; zero pad to multiple of 8].
    p_rows = _r8(input_dim + 1)
    P = np.zeros((p_rows, 3 * T * H), np.float32)
    P[:input_dim] = A0
    P[input_dim] = C0[0]

    # Weight slab W (width 4H; for H=32 that is exactly 128 lanes).
    rows, w_rows = _wslab_layout(H)
    W = np.zeros((w_rows, 4 * H), np.float32)

    # layer-0 recurrent: [r | z | n | 0]
    for gi, off in ((0, 0), (1, H), (2, 2 * H)):
        whh_g, _ = gate(c["whh0"], c["bhh0"], gi)
        W[rows["wh0"]:rows["wh0"] + H, off:off + H] = whh_g.T

    # layer-1 fused (2H, 4H): columns [r | z | n_i | n_h], rows [h0 ; h1]
    r1 = rows["w1"]
    for gi, off in ((0, 0), (1, H)):
        W[r1:r1 + H, off:off + H] = c["wih1"][gi * H:(gi + 1) * H, :].T
        W[r1 + H:r1 + 2 * H, off:off + H] = c["whh1"][gi * H:(gi + 1) * H, :].T
    W[r1:r1 + H, 2 * H:3 * H] = c["wih1"][2 * H:3 * H, :].T          # n_i (h0 rows)
    W[r1 + H:r1 + 2 * H, 3 * H:4 * H] = c["whh1"][2 * H:3 * H, :].T  # n_h (h1 rows)

    # bias block (8 rows)
    rb = rows["bias"]
    W[rb, 0:H] = c["bih1"][0:H] + c["bhh1"][0:H]                 # b1_r
    W[rb, H:2 * H] = c["bih1"][H:2 * H] + c["bhh1"][H:2 * H]     # b1_z
    W[rb, 2 * H:3 * H] = c["bih1"][2 * H:3 * H]                  # b1_ni
    W[rb, 3 * H:4 * H] = c["bhh1"][2 * H:3 * H]                  # b1_nh
    W[rb + 1, 0:H] = c["bhh0"][2 * H:3 * H]                      # bh0n
    W[rb + 2, 0:H] = c["bm1"]
    W[rb + 2, H:2 * H] = c["bm2"]
    W[rb + 2, 2 * H:3 * H] = c["lng"]
    W[rb + 2, 3 * H:4 * H] = c["lnb"]
    W[rb + 3, 0:2 * H] = c["bg1"]
    W[rb + 3, 2 * H:3 * H] = c["bg2"]

    # head matrices: [wm1 | wm2 | wg1] packed side-by-side; wg2 below.
    rh = rows["head"]
    W[rh:rh + H, 0:H] = c["wm1"].T
    W[rh:rh + H, H:2 * H] = c["wm2"].T
    W[rh:rh + H, 2 * H:4 * H] = c["wg1"].T
    rg = rows["wg2"]
    W[rg:rg + 2 * H, 0:H] = c["wg2"].T

    return {"P": jnp.asarray(P, dtype=jnp.float32),
            "W": jnp.asarray(W, dtype=jnp.float32)}


# ----------------------------------------------------------------------------
# Wrapper
# ----------------------------------------------------------------------------

def temporal_wave_dynamics_forward(x, kparams, wave_dim, n_timesteps):
    """x: (B, input_dim) float32.  Returns dict like the PyTorch module."""
    B = x.shape[0]
    T, H = n_timesteps, wave_dim
    vmem = pl.BlockSpec(memory_space=pltpu.MemorySpace.VMEM)

    gf_flat = pl.pallas_call(
        functools.partial(_temporal_wave_kernel, wave_dim=H, n_timesteps=T),
        out_shape=jax.ShapeDtypeStruct((T * B, H), jnp.float32),
        in_specs=[vmem, vmem, vmem],
        out_specs=vmem,
        compiler_params=pltpu.CompilerParams(
            # actual footprint ~200 KiB; 4 MiB leaves headroom on every
            # generation (incl. v7x's smaller 64 MiB physical VMEM).
            vmem_limit_bytes=4 * 1024 * 1024),
    )(x, kparams["P"], kparams["W"])

    # Slab rows are t-major: row = t*B + b  ->  (B, T, H).  Layout plumbing only.
    gf = jnp.swapaxes(gf_flat.reshape(T, B, H), 0, 1)

    # quantum_evolution = gamma_factor * h_bar * eps0 * phi (left-to-right,
    # fp32).  The product lands in the fp32 subnormal range (~1.5e-45); TPU
    # flushes subnormals to zero, so this is effectively zeros — done outside
    # the kernel to keep the kernel's store lane budget for gamma_factor.
    qe = gf * np.float32(H_BAR) * np.float32(EPS_0) * np.float32(PHI)
    return {"quantum_evolution": qe, "gamma_factor": gf}


# ----------------------------------------------------------------------------
# Plain-JAX reference (PyTorch semantics, canonical params) for validation.
# ----------------------------------------------------------------------------

def _reference_gamma(x, c, wave_dim, n_timesteps):
    H, T = wave_dim, n_timesteps
    B = x.shape[0]
    dot = lambda a, b: jnp.dot(a, b, precision=jax.lax.Precision.HIGHEST)

    # Conv1d(k=3, pad=1) on a length-1 signal == center-tap matmul.
    g = dot(x, c["conv_w"][:, :, 1].T) + c["conv_b"][None, :]          # (B, H)
    # repeat(1,1,T).view(B,T,H)
    ws = jnp.repeat(g, T, axis=1).reshape(B, T, H)

    def cell(x_t, h, wih, whh, bih, bhh):
        gi = dot(x_t, wih.T) + bih
        gh = dot(h, whh.T) + bhh
        r = jax.nn.sigmoid(gi[:, :H] + gh[:, :H])
        z = jax.nn.sigmoid(gi[:, H:2 * H] + gh[:, H:2 * H])
        n = jnp.tanh(gi[:, 2 * H:] + r * gh[:, 2 * H:])
        return (1.0 - z) * n + z * h

    h0 = jnp.zeros((B, H), jnp.float32)
    h1 = jnp.zeros((B, H), jnp.float32)
    states = []
    for t in range(T):
        h0 = cell(ws[:, t], h0, c["wih0"], c["whh0"], c["bih0"], c["bhh0"])
        h1 = cell(h0, h1, c["wih1"], c["whh1"], c["bih1"], c["bhh1"])
        states.append(h1)
    ts = jnp.stack(states, axis=1)                                      # (B, T, H)

    y = dot(ts, c["wm1"].T) + c["bm1"]
    mu = y.mean(-1, keepdims=True)
    var = ((y - mu) ** 2).mean(-1, keepdims=True)
    y = jnp.tanh((y - mu) * jax.lax.rsqrt(var + 1e-5) * c["lng"] + c["lnb"])
    y = dot(y, c["wm2"].T) + c["bm2"]
    u = jnp.maximum(dot(y, c["wg1"].T) + c["bg1"], 0.0)
    return dot(u, c["wg2"].T) + c["bg2"]                                # (B, T, H)


if __name__ == "__main__":
    B, INPUT_DIM, WAVE_DIM, N_TIMESTEPS = 2, 16, 32, 8

    x = jax.random.normal(jax.random.PRNGKey(0), (B, INPUT_DIM), dtype=jnp.float32)
    canon = make_canonical_params(INPUT_DIM, WAVE_DIM, N_TIMESTEPS)
    kparams = prepare_kernel_params(canon, INPUT_DIM, WAVE_DIM, N_TIMESTEPS)

    out = temporal_wave_dynamics_forward(x, kparams, WAVE_DIM, N_TIMESTEPS)
    out = jax.block_until_ready(out)

    assert out["quantum_evolution"].shape == (B, N_TIMESTEPS, WAVE_DIM)
    assert out["gamma_factor"].shape == (B, N_TIMESTEPS, WAVE_DIM)

    # Validate gamma_factor against the plain-JAX PyTorch-semantics reference
    # (quantum_evolution underflows fp32 by construction, same as PyTorch).
    canon_j = {k: jnp.asarray(v) for k, v in canon.items()}
    gf_ref = jax.block_until_ready(_reference_gamma(x, canon_j, WAVE_DIM, N_TIMESTEPS))
    np.testing.assert_allclose(np.asarray(out["gamma_factor"]),
                               np.asarray(gf_ref), rtol=2e-3, atol=2e-3)
    assert np.all(np.isfinite(np.asarray(out["quantum_evolution"])))

    print("KERNEL_OK")
</pallas_src>

<mosaic_0001>
module attributes {stable_mosaic.version = 11 : i64} {
  func.func @_temporal_wave_kernel(%arg0: memref<2x16xf32, #tpu.memory_space<vmem>>, %arg1: memref<24x768xf32, #tpu.memory_space<vmem>>, %arg2: memref<200x128xf32, #tpu.memory_space<vmem>>, %arg3: memref<16x32xf32, #tpu.memory_space<vmem>>) attributes {dimension_semantics = [], scalar_prefetch = 0 : i64, scratch_operands = 0 : i64, tpu.core_type = #tpu.core_type<tc>} {
    %c0 = arith.constant 0 : index
    %c0_0 = arith.constant 0 : index
    %0 = vector.load %arg0[%c0, %c0_0] : memref<2x16xf32, #tpu.memory_space<vmem>>, vector<2x16xf32>
    %c0_1 = arith.constant 0 : index
    %c0_2 = arith.constant 0 : index
    %1 = vector.load %arg1[%c0_1, %c0_2] : memref<24x768xf32, #tpu.memory_space<vmem>>, vector<16x768xf32>
    %c16 = arith.constant 16 : index
    %c0_3 = arith.constant 0 : index
    %2 = vector.load %arg1[%c16, %c0_3] : memref<24x768xf32, #tpu.memory_space<vmem>>, vector<1x768xf32>
    %c0_4 = arith.constant 0 : index
    %c0_5 = arith.constant 0 : index
    %3 = vector.load %arg2[%c0_4, %c0_5] : memref<200x128xf32, #tpu.memory_space<vmem>>, vector<32x128xf32>
    %c32 = arith.constant 32 : index
    %c0_6 = arith.constant 0 : index
    %4 = vector.load %arg2[%c32, %c0_6] : memref<200x128xf32, #tpu.memory_space<vmem>>, vector<64x128xf32>
    %c96 = arith.constant 96 : index
    %c0_7 = arith.constant 0 : index
    %5 = vector.load %arg2[%c96, %c0_7] : memref<200x128xf32, #tpu.memory_space<vmem>>, vector<8x128xf32>
    %6 = vector.extract_strided_slice %5 {offsets = [0, 0], sizes = [1, 128], strides = [1, 1]} : vector<8x128xf32> to vector<1x128xf32>
    %7 = vector.extract_strided_slice %5 {offsets = [1, 0], sizes = [1, 32], strides = [1, 1]} : vector<8x128xf32> to vector<1x32xf32>
    %8 = vector.extract_strided_slice %5 {offsets = [2, 0], sizes = [1, 32], strides = [1, 1]} : vector<8x128xf32> to vector<1x32xf32>
    %9 = vector.extract_strided_slice %5 {offsets = [2, 32], sizes = [1, 32], strides = [1, 1]} : vector<8x128xf32> to vector<1x32xf32>
    %10 = vector.extract_strided_slice %5 {offsets = [2, 64], sizes = [1, 32], strides = [1, 1]} : vector<8x128xf32> to vector<1x32xf32>
    %11 = vector.extract_strided_slice %5 {offsets = [2, 96], sizes = [1, 32], strides = [1, 1]} : vector<8x128xf32> to vector<1x32xf32>
    %12 = vector.extract_strided_slice %5 {offsets = [3, 0], sizes = [1, 64], strides = [1, 1]} : vector<8x128xf32> to vector<1x64xf32>
    %13 = vector.extract_strided_slice %5 {offsets = [3, 64], sizes = [1, 32], strides = [1, 1]} : vector<8x128xf32> to vector<1x32xf32>
    %c104 = arith.constant 104 : index
    %c0_8 = arith.constant 0 : index
    %14 = vector.load %arg2[%c104, %c0_8] : memref<200x128xf32, #tpu.memory_space<vmem>>, vector<32x32xf32>
    %c104_9 = arith.constant 104 : index
    %c32_10 = arith.constant 32 : index
    %15 = vector.load %arg2[%c104_9, %c32_10] : memref<200x128xf32, #tpu.memory_space<vmem>>, vector<32x32xf32>
    %c104_11 = arith.constant 104 : index
    %c64 = arith.constant 64 : index
    %16 = vector.load %arg2[%c104_11, %c64] : memref<200x128xf32, #tpu.memory_space<vmem>>, vector<32x64xf32>
    %c136 = arith.constant 136 : index
    %c0_12 = arith.constant 0 : index
    %17 = vector.load %arg2[%c136, %c0_12] : memref<200x128xf32, #tpu.memory_space<vmem>>, vector<64x32xf32>
    %cst = arith.constant dense<0.000000e+00> : vector<2x768xf32>
    %18 = tpu.matmul %0, %1, %cst {dimension_numbers = #tpu.dot_dimension_numbers<[1], [0], [0], [1], [0, 0, 1, 1], [], []>} : vector<2x16xf32>, vector<16x768xf32>, vector<2x768xf32> -> vector<2x768xf32>
    %19 = vector.broadcast %2 : vector<1x768xf32> to vector<2x768xf32>
    %20 = arith.addf %18, %19 : vector<2x768xf32>
    %cst_13 = arith.constant 0.000000e+00 : f32
    %21 = vector.broadcast %cst_13 : f32 to vector<2x32xf32>
    %cst_14 = arith.constant 0.000000e+00 : f32
    %22 = vector.broadcast %cst_14 : f32 to vector<2x32xf32>
    %cst_15 = arith.constant dense<0.000000e+00> : vector<2x128xf32>
    %23 = tpu.matmul %21, %3, %cst_15 {dimension_numbers = #tpu.dot_dimension_numbers<[1], [0], [0], [1], [0, 0, 1, 1], [], []>} : vector<2x32xf32>, vector<32x128xf32>, vector<2x128xf32> -> vector<2x128xf32>
    %24 = vector.extract_strided_slice %20 {offsets = [0, 0], sizes = [2, 32], strides = [1, 1]} : vector<2x768xf32> to vector<2x32xf32>
    %25 = vector.extract_strided_slice %23 {offsets = [0, 0], sizes = [2, 32], strides = [1, 1]} : vector<2x128xf32> to vector<2x32xf32>
    %26 = arith.addf %24, %25 : vector<2x32xf32>
    %27 = arith.negf %26 : vector<2x32xf32>
    %28 = math.exp %27 : vector<2x32xf32>
    %cst_16 = arith.constant 1.000000e+00 : f32
    %29 = vector.broadcast %cst_16 : f32 to vector<2x32xf32>
    %30 = arith.addf %29, %28 : vector<2x32xf32>
    %31 = arith.divf %29, %30 : vector<2x32xf32>
    %32 = vector.extract_strided_slice %20 {offsets = [0, 256], sizes = [2, 32], strides = [1, 1]} : vector<2x768xf32> to vector<2x32xf32>
    %33 = vector.extract_strided_slice %23 {offsets = [0, 32], sizes = [2, 32], strides = [1, 1]} : vector<2x128xf32> to vector<2x32xf32>
    %34 = arith.addf %32, %33 : vector<2x32xf32>
    %35 = arith.negf %34 : vector<2x32xf32>
    %36 = math.exp %35 : vector<2x32xf32>
    %cst_17 = arith.constant 1.000000e+00 : f32
    %37 = vector.broadcast %cst_17 : f32 to vector<2x32xf32>
    %38 = arith.addf %37, %36 : vector<2x32xf32>
    %39 = arith.divf %37, %38 : vector<2x32xf32>
    %40 = vector.extract_strided_slice %20 {offsets = [0, 512], sizes = [2, 32], strides = [1, 1]} : vector<2x768xf32> to vector<2x32xf32>
    %41 = vector.extract_strided_slice %23 {offsets = [0, 64], sizes = [2, 32], strides = [1, 1]} : vector<2x128xf32> to vector<2x32xf32>
    %42 = vector.broadcast %7 : vector<1x32xf32> to vector<2x32xf32>
    %43 = arith.addf %41, %42 : vector<2x32xf32>
    %44 = arith.mulf %31, %43 : vector<2x32xf32>
    %45 = arith.addf %40, %44 : vector<2x32xf32>
    %46 = math.tanh %45 : vector<2x32xf32>
    %cst_18 = arith.constant 1.000000e+00 : f32
    %47 = vector.broadcast %cst_18 : f32 to vector<2x32xf32>
    %48 = arith.subf %47, %39 : vector<2x32xf32>
    %49 = arith.mulf %48, %46 : vector<2x32xf32>
    %50 = arith.mulf %39, %21 : vector<2x32xf32>
    %51 = arith.addf %49, %50 : vector<2x32xf32>
    %52 = tpu.concatenate %51, %22 in 1 : vector<2x32xf32>, vector<2x32xf32> -> vector<2x64xf32>
    %cst_19 = arith.constant dense<0.000000e+00> : vector<2x128xf32>
    %53 = tpu.matmul %52, %4, %cst_19 {dimension_numbers = #tpu.dot_dimension_numbers<[1], [0], [0], [1], [0, 0, 1, 1], [], []>} : vector<2x64xf32>, vector<64x128xf32>, vector<2x128xf32> -> vector<2x128xf32>
    %54 = vector.broadcast %6 : vector<1x128xf32> to vector<2x128xf32>
    %55 = arith.addf %53, %54 : vector<2x128xf32>
    %56 = vector.extract_strided_slice %55 {offsets = [0, 0], sizes = [2, 32], strides = [1, 1]} : vector<2x128xf32> to vector<2x32xf32>
    %57 = arith.negf %56 : vector<2x32xf32>
    %58 = math.exp %57 : vector<2x32xf32>
    %cst_20 = arith.constant 1.000000e+00 : f32
    %59 = vector.broadcast %cst_20 : f32 to vector<2x32xf32>
    %60 = arith.addf %59, %58 : vector<2x32xf32>
    %61 = arith.divf %59, %60 : vector<2x32xf32>
    %62 = vector.extract_strided_slice %55 {offsets = [0, 32], sizes = [2, 32], strides = [1, 1]} : vector<2x128xf32> to vector<2x32xf32>
    %63 = arith.negf %62 : vector<2x32xf32>
    %64 = math.exp %63 : vector<2x32xf32>
    %cst_21 = arith.constant 1.000000e+00 : f32
    %65 = vector.broadcast %cst_21 : f32 to vector<2x32xf32>
    %66 = arith.addf %65, %64 : vector<2x32xf32>
    %67 = arith.divf %65, %66 : vector<2x32xf32>
    %68 = vector.extract_strided_slice %55 {offsets = [0, 64], sizes = [2, 32], strides = [1, 1]} : vector<2x128xf32> to vector<2x32xf32>
    %69 = vector.extract_strided_slice %55 {offsets = [0, 96], sizes = [2, 32], strides = [1, 1]} : vector<2x128xf32> to vector<2x32xf32>
    %70 = arith.mulf %61, %69 : vector<2x32xf32>
    %71 = arith.addf %68, %70 : vector<2x32xf32>
    %72 = math.tanh %71 : vector<2x32xf32>
    %cst_22 = arith.constant 1.000000e+00 : f32
    %73 = vector.broadcast %cst_22 : f32 to vector<2x32xf32>
    %74 = arith.subf %73, %67 : vector<2x32xf32>
    %75 = arith.mulf %74, %72 : vector<2x32xf32>
    %76 = arith.mulf %67, %22 : vector<2x32xf32>
    %77 = arith.addf %75, %76 : vector<2x32xf32>
    %cst_23 = arith.constant dense<0.000000e+00> : vector<2x128xf32>
    %78 = tpu.matmul %51, %3, %cst_23 {dimension_numbers = #tpu.dot_dimension_numbers<[1], [0], [0], [1], [0, 0, 1, 1], [], []>} : vector<2x32xf32>, vector<32x128xf32>, vector<2x128xf32> -> vector<2x128xf32>
    %79 = vector.extract_strided_slice %20 {offsets = [0, 32], sizes = [2, 32], strides = [1, 1]} : vector<2x768xf32> to vector<2x32xf32>
    %80 = vector.extract_strided_slice %78 {offsets = [0, 0], sizes = [2, 32], strides = [1, 1]} : vector<2x128xf32> to vector<2x32xf32>
    %81 = arith.addf %79, %80 : vector<2x32xf32>
    %82 = arith.negf %81 : vector<2x32xf32>
    %83 = math.exp %82 : vector<2x32xf32>
    %cst_24 = arith.constant 1.000000e+00 : f32
    %84 = vector.broadcast %cst_24 : f32 to vector<2x32xf32>
    %85 = arith.addf %84, %83 : vector<2x32xf32>
    %86 = arith.divf %84, %85 : vector<2x32xf32>
    %87 = vector.extract_strided_slice %20 {offsets = [0, 288], sizes = [2, 32], strides = [1, 1]} : vector<2x768xf32> to vector<2x32xf32>
    %88 = vector.extract_strided_slice %78 {offsets = [0, 32], sizes = [2, 32], strides = [1, 1]} : vector<2x128xf32> to vector<2x32xf32>
    %89 = arith.addf %87, %88 : vector<2x32xf32>
    %90 = arith.negf %89 : vector<2x32xf32>
    %91 = math.exp %90 : vector<2x32xf32>
    %cst_25 = arith.constant 1.000000e+00 : f32
    %92 = vector.broadcast %cst_25 : f32 to vector<2x32xf32>
    %93 = arith.addf %92, %91 : vector<2x32xf32>
    %94 = arith.divf %92, %93 : vector<2x32xf32>
    %95 = vector.extract_strided_slice %20 {offsets = [0, 544], sizes = [2, 32], strides = [1, 1]} : vector<2x768xf32> to vector<2x32xf32>
    %96 = vector.extract_strided_slice %78 {offsets = [0, 64], sizes = [2, 32], strides = [1, 1]} : vector<2x128xf32> to vector<2x32xf32>
    %97 = vector.broadcast %7 : vector<1x32xf32> to vector<2x32xf32>
    %98 = arith.addf %96, %97 : vector<2x32xf32>
    %99 = arith.mulf %86, %98 : vector<2x32xf32>
    %100 = arith.addf %95, %99 : vector<2x32xf32>
    %101 = math.tanh %100 : vector<2x32xf32>
    %cst_26 = arith.constant 1.000000e+00 : f32
    %102 = vector.broadcast %cst_26 : f32 to vector<2x32xf32>
    %103 = arith.subf %102, %94 : vector<2x32xf32>
    %104 = arith.mulf %103, %101 : vector<2x32xf32>
    %105 = arith.mulf %94, %51 : vector<2x32xf32>
    %106 = arith.addf %104, %105 : vector<2x32xf32>
    %107 = tpu.concatenate %106, %77 in 1 : vector<2x32xf32>, vector<2x32xf32> -> vector<2x64xf32>
    %cst_27 = arith.constant dense<0.000000e+00> : vector<2x128xf32>
    %108 = tpu.matmul %107, %4, %cst_27 {dimension_numbers = #tpu.dot_dimension_numbers<[1], [0], [0], [1], [0, 0, 1, 1], [], []>} : vector<2x64xf32>, vector<64x128xf32>, vector<2x128xf32> -> vector<2x128xf32>
    %109 = vector.broadcast %6 : vector<1x128xf32> to vector<2x128xf32>
    %110 = arith.addf %108, %109 : vector<2x128xf32>
    %111 = vector.extract_strided_slice %110 {offsets = [0, 0], sizes = [2, 32], strides = [1, 1]} : vector<2x128xf32> to vector<2x32xf32>
    %112 = arith.negf %111 : vector<2x32xf32>
    %113 = math.exp %112 : vector<2x32xf32>
    %cst_28 = arith.constant 1.000000e+00 : f32
    %114 = vector.broadcast %cst_28 : f32 to vector<2x32xf32>
    %115 = arith.addf %114, %113 : vector<2x32xf32>
    %116 = arith.divf %114, %115 : vector<2x32xf32>
    %117 = vector.extract_strided_slice %110 {offsets = [0, 32], sizes = [2, 32], strides = [1, 1]} : vector<2x128xf32> to vector<2x32xf32>
    %118 = arith.negf %117 : vector<2x32xf32>
    %119 = math.exp %118 : vector<2x32xf32>
    %cst_29 = arith.constant 1.000000e+00 : f32
    %120 = vector.broadcast %cst_29 : f32 to vector<2x32xf32>
    %121 = arith.addf %120, %119 : vector<2x32xf32>
    %122 = arith.divf %120, %121 : vector<2x32xf32>
    %123 = vector.extract_strided_slice %110 {offsets = [0, 64], sizes = [2, 32], strides = [1, 1]} : vector<2x128xf32> to vector<2x32xf32>
    %124 = vector.extract_strided_slice %110 {offsets = [0, 96], sizes = [2, 32], strides = [1, 1]} : vector<2x128xf32> to vector<2x32xf32>
    %125 = arith.mulf %116, %124 : vector<2x32xf32>
    %126 = arith.addf %123, %125 : vector<2x32xf32>
    %127 = math.tanh %126 : vector<2x32xf32>
    %cst_30 = arith.constant 1.000000e+00 : f32
    %128 = vector.broadcast %cst_30 : f32 to vector<2x32xf32>
    %129 = arith.subf %128, %122 : vector<2x32xf32>
    %130 = arith.mulf %129, %127 : vector<2x32xf32>
    %131 = arith.mulf %122, %77 : vector<2x32xf32>
    %132 = arith.addf %130, %131 : vector<2x32xf32>
    %cst_31 = arith.constant dense<0.000000e+00> : vector<2x128xf32>
    %133 = tpu.matmul %106, %3, %cst_31 {dimension_numbers = #tpu.dot_dimension_numbers<[1], [0], [0], [1], [0, 0, 1, 1], [], []>} : vector<2x32xf32>, vector<32x128xf32>, vector<2x128xf32> -> vector<2x128xf32>
    %134 = vector.extract_strided_slice %20 {offsets = [0, 64], sizes = [2, 32], strides = [1, 1]} : vector<2x768xf32> to vector<2x32xf32>
    %135 = vector.extract_strided_slice %133 {offsets = [0, 0], sizes = [2, 32], strides = [1, 1]} : vector<2x128xf32> to vector<2x32xf32>
    %136 = arith.addf %134, %135 : vector<2x32xf32>
    %137 = arith.negf %136 : vector<2x32xf32>
    %138 = math.exp %137 : vector<2x32xf32>
    %cst_32 = arith.constant 1.000000e+00 : f32
    %139 = vector.broadcast %cst_32 : f32 to vector<2x32xf32>
    %140 = arith.addf %139, %138 : vector<2x32xf32>
    %141 = arith.divf %139, %140 : vector<2x32xf32>
    %142 = vector.extract_strided_slice %20 {offsets = [0, 320], sizes = [2, 32], strides = [1, 1]} : vector<2x768xf32> to vector<2x32xf32>
    %143 = vector.extract_strided_slice %133 {offsets = [0, 32], sizes = [2, 32], strides = [1, 1]} : vector<2x128xf32> to vector<2x32xf32>
    %144 = arith.addf %142, %143 : vector<2x32xf32>
    %145 = arith.negf %144 : vector<2x32xf32>
    %146 = math.exp %145 : vector<2x32xf32>
    %cst_33 = arith.constant 1.000000e+00 : f32
    %147 = vector.broadcast %cst_33 : f32 to vector<2x32xf32>
    %148 = arith.addf %147, %146 : vector<2x32xf32>
    %149 = arith.divf %147, %148 : vector<2x32xf32>
    %150 = vector.extract_strided_slice %20 {offsets = [0, 576], sizes = [2, 32], strides = [1, 1]} : vector<2x768xf32> to vector<2x32xf32>
    %151 = vector.extract_strided_slice %133 {offsets = [0, 64], sizes = [2, 32], strides = [1, 1]} : vector<2x128xf32> to vector<2x32xf32>
    %152 = vector.broadcast %7 : vector<1x32xf32> to vector<2x32xf32>
    %153 = arith.addf %151, %152 : vector<2x32xf32>
    %154 = arith.mulf %141, %153 : vector<2x32xf32>
    %155 = arith.addf %150, %154 : vector<2x32xf32>
    %156 = math.tanh %155 : vector<2x32xf32>
    %cst_34 = arith.constant 1.000000e+00 : f32
    %157 = vector.broadcast %cst_34 : f32 to vector<2x32xf32>
    %158 = arith.subf %157, %149 : vector<2x32xf32>
    %159 = arith.mulf %158, %156 : vector<2x32xf32>
    %160 = arith.mulf %149, %106 : vector<2x32xf32>
    %161 = arith.addf %159, %160 : vector<2x32xf32>
    %162 = tpu.concatenate %161, %132 in 1 : vector<2x32xf32>, vector<2x32xf32> -> vector<2x64xf32>
    %cst_35 = arith.constant dense<0.000000e+00> : vector<2x128xf32>
    %163 = tpu.matmul %162, %4, %cst_35 {dimension_numbers = #tpu.dot_dimension_numbers<[1], [0], [0], [1], [0, 0, 1, 1], [], []>} : vector<2x64xf32>, vector<64x128xf32>, vector<2x128xf32> -> vector<2x128xf32>
    %164 = vector.broadcast %6 : vector<1x128xf32> to vector<2x128xf32>
    %165 = arith.addf %163, %164 : vector<2x128xf32>
    %166 = vector.extract_strided_slice %165 {offsets = [0, 0], sizes = [2, 32], strides = [1, 1]} : vector<2x128xf32> to vector<2x32xf32>
    %167 = arith.negf %166 : vector<2x32xf32>
    %168 = math.exp %167 : vector<2x32xf32>
    %cst_36 = arith.constant 1.000000e+00 : f32
    %169 = vector.broadcast %cst_36 : f32 to vector<2x32xf32>
    %170 = arith.addf %169, %168 : vector<2x32xf32>
    %171 = arith.divf %169, %170 : vector<2x32xf32>
    %172 = vector.extract_strided_slice %165 {offsets = [0, 32], sizes = [2, 32], strides = [1, 1]} : vector<2x128xf32> to vector<2x32xf32>
    %173 = arith.negf %172 : vector<2x32xf32>
    %174 = math.exp %173 : vector<2x32xf32>
    %cst_37 = arith.constant 1.000000e+00 : f32
    %175 = vector.broadcast %cst_37 : f32 to vector<2x32xf32>
    %176 = arith.addf %175, %174 : vector<2x32xf32>
    %177 = arith.divf %175, %176 : vector<2x32xf32>
    %178 = vector.extract_strided_slice %165 {offsets = [0, 64], sizes = [2, 32], strides = [1, 1]} : vector<2x128xf32> to vector<2x32xf32>
    %179 = vector.extract_strided_slice %165 {offsets = [0, 96], sizes = [2, 32], strides = [1, 1]} : vector<2x128xf32> to vector<2x32xf32>
    %180 = arith.mulf %171, %179 : vector<2x32xf32>
    %181 = arith.addf %178, %180 : vector<2x32xf32>
    %182 = math.tanh %181 : vector<2x32xf32>
    %cst_38 = arith.constant 1.000000e+00 : f32
    %183 = vector.broadcast %cst_38 : f32 to vector<2x32xf32>
    %184 = arith.subf %183, %177 : vector<2x32xf32>
    %185 = arith.mulf %184, %182 : vector<2x32xf32>
    %186 = arith.mulf %177, %132 : vector<2x32xf32>
    %187 = arith.addf %185, %186 : vector<2x32xf32>
    %cst_39 = arith.constant dense<0.000000e+00> : vector<2x128xf32>
    %188 = tpu.matmul %161, %3, %cst_39 {dimension_numbers = #tpu.dot_dimension_numbers<[1], [0], [0], [1], [0, 0, 1, 1], [], []>} : vector<2x32xf32>, vector<32x128xf32>, vector<2x128xf32> -> vector<2x128xf32>
    %189 = vector.extract_strided_slice %20 {offsets = [0, 96], sizes = [2, 32], strides = [1, 1]} : vector<2x768xf32> to vector<2x32xf32>
    %190 = vector.extract_strided_slice %188 {offsets = [0, 0], sizes = [2, 32], strides = [1, 1]} : vector<2x128xf32> to vector<2x32xf32>
    %191 = arith.addf %189, %190 : vector<2x32xf32>
    %192 = arith.negf %191 : vector<2x32xf32>
    %193 = math.exp %192 : vector<2x32xf32>
    %cst_40 = arith.constant 1.000000e+00 : f32
    %194 = vector.broadcast %cst_40 : f32 to vector<2x32xf32>
    %195 = arith.addf %194, %193 : vector<2x32xf32>
    %196 = arith.divf %194, %195 : vector<2x32xf32>
    %197 = vector.extract_strided_slice %20 {offsets = [0, 352], sizes = [2, 32], strides = [1, 1]} : vector<2x768xf32> to vector<2x32xf32>
    %198 = vector.extract_strided_slice %188 {offsets = [0, 32], sizes = [2, 32], strides = [1, 1]} : vector<2x128xf32> to vector<2x32xf32>
    %199 = arith.addf %197, %198 : vector<2x32xf32>
    %200 = arith.negf %199 : vector<2x32xf32>
    %201 = math.exp %200 : vector<2x32xf32>
    %cst_41 = arith.constant 1.000000e+00 : f32
    %202 = vector.broadcast %cst_41 : f32 to vector<2x32xf32>
    %203 = arith.addf %202, %201 : vector<2x32xf32>
    %204 = arith.divf %202, %203 : vector<2x32xf32>
    %205 = vector.extract_strided_slice %20 {offsets = [0, 608], sizes = [2, 32], strides = [1, 1]} : vector<2x768xf32> to vector<2x32xf32>
    %206 = vector.extract_strided_slice %188 {offsets = [0, 64], sizes = [2, 32], strides = [1, 1]} : vector<2x128xf32> to vector<2x32xf32>
    %207 = vector.broadcast %7 : vector<1x32xf32> to vector<2x32xf32>
    %208 = arith.addf %206, %207 : vector<2x32xf32>
    %209 = arith.mulf %196, %208 : vector<2x32xf32>
    %210 = arith.addf %205, %209 : vector<2x32xf32>
    %211 = math.tanh %210 : vector<2x32xf32>
    %cst_42 = arith.constant 1.000000e+00 : f32
    %212 = vector.broadcast %cst_42 : f32 to vector<2x32xf32>
    %213 = arith.subf %212, %204 : vector<2x32xf32>
    %214 = arith.mulf %213, %211 : vector<2x32xf32>
    %215 = arith.mulf %204, %161 : vector<2x32xf32>
    %216 = arith.addf %214, %215 : vector<2x32xf32>
    %217 = tpu.concatenate %216, %187 in 1 : vector<2x32xf32>, vector<2x32xf32> -> vector<2x64xf32>
    %cst_43 = arith.constant dense<0.000000e+00> : vector<2x128xf32>
    %218 = tpu.matmul %217, %4, %cst_43 {dimension_numbers = #tpu.dot_dimension_numbers<[1], [0], [0], [1], [0, 0, 1, 1], [], []>} : vector<2x64xf32>, vector<64x128xf32>, vector<2x128xf32> -> vector<2x128xf32>
    %219 = vector.broadcast %6 : vector<1x128xf32> to vector<2x128xf32>
    %220 = arith.addf %218, %219 : vector<2x128xf32>
    %221 = vector.extract_strided_slice %220 {offsets = [0, 0], sizes = [2, 32], strides = [1, 1]} : vector<2x128xf32> to vector<2x32xf32>
    %222 = arith.negf %221 : vector<2x32xf32>
    %223 = math.exp %222 : vector<2x32xf32>
    %cst_44 = arith.constant 1.000000e+00 : f32
    %224 = vector.broadcast %cst_44 : f32 to vector<2x32xf32>
    %225 = arith.addf %224, %223 : vector<2x32xf32>
    %226 = arith.divf %224, %225 : vector<2x32xf32>
    %227 = vector.extract_strided_slice %220 {offsets = [0, 32], sizes = [2, 32], strides = [1, 1]} : vector<2x128xf32> to vector<2x32xf32>
    %228 = arith.negf %227 : vector<2x32xf32>
    %229 = math.exp %228 : vector<2x32xf32>
    %cst_45 = arith.constant 1.000000e+00 : f32
    %230 = vector.broadcast %cst_45 : f32 to vector<2x32xf32>
    %231 = arith.addf %230, %229 : vector<2x32xf32>
    %232 = arith.divf %230, %231 : vector<2x32xf32>
    %233 = vector.extract_strided_slice %220 {offsets = [0, 64], sizes = [2, 32], strides = [1, 1]} : vector<2x128xf32> to vector<2x32xf32>
    %234 = vector.extract_strided_slice %220 {offsets = [0, 96], sizes = [2, 32], strides = [1, 1]} : vector<2x128xf32> to vector<2x32xf32>
    %235 = arith.mulf %226, %234 : vector<2x32xf32>
    %236 = arith.addf %233, %235 : vector<2x32xf32>
    %237 = math.tanh %236 : vector<2x32xf32>
    %cst_46 = arith.constant 1.000000e+00 : f32
    %238 = vector.broadcast %cst_46 : f32 to vector<2x32xf32>
    %239 = arith.subf %238, %232 : vector<2x32xf32>
    %240 = arith.mulf %239, %237 : vector<2x32xf32>
    %241 = arith.mulf %232, %187 : vector<2x32xf32>
    %242 = arith.addf %240, %241 : vector<2x32xf32>
    %cst_47 = arith.constant dense<0.000000e+00> : vector<2x128xf32>
    %243 = tpu.matmul %216, %3, %cst_47 {dimension_numbers = #tpu.dot_dimension_numbers<[1], [0], [0], [1], [0, 0, 1, 1], [], []>} : vector<2x32xf32>, vector<32x128xf32>, vector<2x128xf32> -> vector<2x128xf32>
    %244 = vector.extract_strided_slice %20 {offsets = [0, 128], sizes = [2, 32], strides = [1, 1]} : vector<2x768xf32> to vector<2x32xf32>
    %245 = vector.extract_strided_slice %243 {offsets = [0, 0], sizes = [2, 32], strides = [1, 1]} : vector<2x128xf32> to vector<2x32xf32>
    %246 = arith.addf %244, %245 : vector<2x32xf32>
    %247 = arith.negf %246 : vector<2x32xf32>
    %248 = math.exp %247 : vector<2x32xf32>
    %cst_48 = arith.constant 1.000000e+00 : f32
    %249 = vector.broadcast %cst_48 : f32 to vector<2x32xf32>
    %250 = arith.addf %249, %248 : vector<2x32xf32>
    %251 = arith.divf %249, %250 : vector<2x32xf32>
    %252 = vector.extract_strided_slice %20 {offsets = [0, 384], sizes = [2, 32], strides = [1, 1]} : vector<2x768xf32> to vector<2x32xf32>
    %253 = vector.extract_strided_slice %243 {offsets = [0, 32], sizes = [2, 32], strides = [1, 1]} : vector<2x128xf32> to vector<2x32xf32>
    %254 = arith.addf %252, %253 : vector<2x32xf32>
    %255 = arith.negf %254 : vector<2x32xf32>
    %256 = math.exp %255 : vector<2x32xf32>
    %cst_49 = arith.constant 1.000000e+00 : f32
    %257 = vector.broadcast %cst_49 : f32 to vector<2x32xf32>
    %258 = arith.addf %257, %256 : vector<2x32xf32>
    %259 = arith.divf %257, %258 : vector<2x32xf32>
    %260 = vector.extract_strided_slice %20 {offsets = [0, 640], sizes = [2, 32], strides = [1, 1]} : vector<2x768xf32> to vector<2x32xf32>
    %261 = vector.extract_strided_slice %243 {offsets = [0, 64], sizes = [2, 32], strides = [1, 1]} : vector<2x128xf32> to vector<2x32xf32>
    %262 = vector.broadcast %7 : vector<1x32xf32> to vector<2x32xf32>
    %263 = arith.addf %261, %262 : vector<2x32xf32>
    %264 = arith.mulf %251, %263 : vector<2x32xf32>
    %265 = arith.addf %260, %264 : vector<2x32xf32>
    %266 = math.tanh %265 : vector<2x32xf32>
    %cst_50 = arith.constant 1.000000e+00 : f32
    %267 = vector.broadcast %cst_50 : f32 to vector<2x32xf32>
    %268 = arith.subf %267, %259 : vector<2x32xf32>
    %269 = arith.mulf %268, %266 : vector<2x32xf32>
    %270 = arith.mulf %259, %216 : vector<2x32xf32>
    %271 = arith.addf %269, %270 : vector<2x32xf32>
    %272 = tpu.concatenate %271, %242 in 1 : vector<2x32xf32>, vector<2x32xf32> -> vector<2x64xf32>
    %cst_51 = arith.constant dense<0.000000e+00> : vector<2x128xf32>
    %273 = tpu.matmul %272, %4, %cst_51 {dimension_numbers = #tpu.dot_dimension_numbers<[1], [0], [0], [1], [0, 0, 1, 1], [], []>} : vector<2x64xf32>, vector<64x128xf32>, vector<2x128xf32> -> vector<2x128xf32>
    %274 = vector.broadcast %6 : vector<1x128xf32> to vector<2x128xf32>
    %275 = arith.addf %273, %274 : vector<2x128xf32>
    %276 = vector.extract_strided_slice %275 {offsets = [0, 0], sizes = [2, 32], strides = [1, 1]} : vector<2x128xf32> to vector<2x32xf32>
    %277 = arith.negf %276 : vector<2x32xf32>
    %278 = math.exp %277 : vector<2x32xf32>
    %cst_52 = arith.constant 1.000000e+00 : f32
    %279 = vector.broadcast %cst_52 : f32 to vector<2x32xf32>
    %280 = arith.addf %279, %278 : vector<2x32xf32>
    %281 = arith.divf %279, %280 : vector<2x32xf32>
    %282 = vector.extract_strided_slice %275 {offsets = [0, 32], sizes = [2, 32], strides = [1, 1]} : vector<2x128xf32> to vector<2x32xf32>
    %283 = arith.negf %282 : vector<2x32xf32>
    %284 = math.exp %283 : vector<2x32xf32>
    %cst_53 = arith.constant 1.000000e+00 : f32
    %285 = vector.broadcast %cst_53 : f32 to vector<2x32xf32>
    %286 = arith.addf %285, %284 : vector<2x32xf32>
    %287 = arith.divf %285, %286 : vector<2x32xf32>
    %288 = vector.extract_strided_slice %275 {offsets = [0, 64], sizes = [2, 32], strides = [1, 1]} : vector<2x128xf32> to vector<2x32xf32>
    %289 = vector.extract_strided_slice %275 {offsets = [0, 96], sizes = [2, 32], strides = [1, 1]} : vector<2x128xf32> to vector<2x32xf32>
    %290 = arith.mulf %281, %289 : vector<2x32xf32>
    %291 = arith.addf %288, %290 : vector<2x32xf32>
    %292 = math.tanh %291 : vector<2x32xf32>
    %cst_54 = arith.constant 1.000000e+00 : f32
    %293 = vector.broadcast %cst_54 : f32 to vector<2x32xf32>
    %294 = arith.subf %293, %287 : vector<2x32xf32>
    %295 = arith.mulf %294, %292 : vector<2x32xf32>
    %296 = arith.mulf %287, %242 : vector<2x32xf32>
    %297 = arith.addf %295, %296 : vector<2x32xf32>
    %cst_55 = arith.constant dense<0.000000e+00> : vector<2x128xf32>
    %298 = tpu.matmul %271, %3, %cst_55 {dimension_numbers = #tpu.dot_dimension_numbers<[1], [0], [0], [1], [0, 0, 1, 1], [], []>} : vector<2x32xf32>, vector<32x128xf32>, vector<2x128xf32> -> vector<2x128xf32>
    %299 = vector.extract_strided_slice %20 {offsets = [0, 160], sizes = [2, 32], strides = [1, 1]} : vector<2x768xf32> to vector<2x32xf32>
    %300 = vector.extract_strided_slice %298 {offsets = [0, 0], sizes = [2, 32], strides = [1, 1]} : vector<2x128xf32> to vector<2x32xf32>
    %301 = arith.addf %299, %300 : vector<2x32xf32>
    %302 = arith.negf %301 : vector<2x32xf32>
    %303 = math.exp %302 : vector<2x32xf32>
    %cst_56 = arith.constant 1.000000e+00 : f32
    %304 = vector.broadcast %cst_56 : f32 to vector<2x32xf32>
    %305 = arith.addf %304, %303 : vector<2x32xf32>
    %306 = arith.divf %304, %305 : vector<2x32xf32>
    %307 = vector.extract_strided_slice %20 {offsets = [0, 416], sizes = [2, 32], strides = [1, 1]} : vector<2x768xf32> to vector<2x32xf32>
    %308 = vector.extract_strided_slice %298 {offsets = [0, 32], sizes = [2, 32], strides = [1, 1]} : vector<2x128xf32> to vector<2x32xf32>
    %309 = arith.addf %307, %308 : vector<2x32xf32>
    %310 = arith.negf %309 : vector<2x32xf32>
    %311 = math.exp %310 : vector<2x32xf32>
    %cst_57 = arith.constant 1.000000e+00 : f32
    %312 = vector.broadcast %cst_57 : f32 to vector<2x32xf32>
    %313 = arith.addf %312, %311 : vector<2x32xf32>
    %314 = arith.divf %312, %313 : vector<2x32xf32>
    %315 = vector.extract_strided_slice %20 {offsets = [0, 672], sizes = [2, 32], strides = [1, 1]} : vector<2x768xf32> to vector<2x32xf32>
    %316 = vector.extract_strided_slice %298 {offsets = [0, 64], sizes = [2, 32], strides = [1, 1]} : vector<2x128xf32> to vector<2x32xf32>
    %317 = vector.broadcast %7 : vector<1x32xf32> to vector<2x32xf32>
    %318 = arith.addf %316, %317 : vector<2x32xf32>
    %319 = arith.mulf %306, %318 : vector<2x32xf32>
    %320 = arith.addf %315, %319 : vector<2x32xf32>
    %321 = math.tanh %320 : vector<2x32xf32>
    %cst_58 = arith.constant 1.000000e+00 : f32
    %322 = vector.broadcast %cst_58 : f32 to vector<2x32xf32>
    %323 = arith.subf %322, %314 : vector<2x32xf32>
    %324 = arith.mulf %323, %321 : vector<2x32xf32>
    %325 = arith.mulf %314, %271 : vector<2x32xf32>
    %326 = arith.addf %324, %325 : vector<2x32xf32>
    %327 = tpu.concatenate %326, %297 in 1 : vector<2x32xf32>, vector<2x32xf32> -> vector<2x64xf32>
    %cst_59 = arith.constant dense<0.000000e+00> : vector<2x128xf32>
    %328 = tpu.matmul %327, %4, %cst_59 {dimension_numbers = #tpu.dot_dimension_numbers<[1], [0], [0], [1], [0, 0, 1, 1], [], []>} : vector<2x64xf32>, vector<64x128xf32>, vector<2x128xf32> -> vector<2x128xf32>
    %329 = vector.broadcast %6 : vector<1x128xf32> to vector<2x128xf32>
    %330 = arith.addf %328, %329 : vector<2x128xf32>
    %331 = vector.extract_strided_slice %330 {offsets = [0, 0], sizes = [2, 32], strides = [1, 1]} : vector<2x128xf32> to vector<2x32xf32>
    %332 = arith.negf %331 : vector<2x32xf32>
    %333 = math.exp %332 : vector<2x32xf32>
    %cst_60 = arith.constant 1.000000e+00 : f32
    %334 = vector.broadcast %cst_60 : f32 to vector<2x32xf32>
    %335 = arith.addf %334, %333 : vector<2x32xf32>
    %336 = arith.divf %334, %335 : vector<2x32xf32>
    %337 = vector.extract_strided_slice %330 {offsets = [0, 32], sizes = [2, 32], strides = [1, 1]} : vector<2x128xf32> to vector<2x32xf32>
    %338 = arith.negf %337 : vector<2x32xf32>
    %339 = math.exp %338 : vector<2x32xf32>
    %cst_61 = arith.constant 1.000000e+00 : f32
    %340 = vector.broadcast %cst_61 : f32 to vector<2x32xf32>
    %341 = arith.addf %340, %339 : vector<2x32xf32>
    %342 = arith.divf %340, %341 : vector<2x32xf32>
    %343 = vector.extract_strided_slice %330 {offsets = [0, 64], sizes = [2, 32], strides = [1, 1]} : vector<2x128xf32> to vector<2x32xf32>
    %344 = vector.extract_strided_slice %330 {offsets = [0, 96], sizes = [2, 32], strides = [1, 1]} : vector<2x128xf32> to vector<2x32xf32>
    %345 = arith.mulf %336, %344 : vector<2x32xf32>
    %346 = arith.addf %343, %345 : vector<2x32xf32>
    %347 = math.tanh %346 : vector<2x32xf32>
    %cst_62 = arith.constant 1.000000e+00 : f32
    %348 = vector.broadcast %cst_62 : f32 to vector<2x32xf32>
    %349 = arith.subf %348, %342 : vector<2x32xf32>
    %350 = arith.mulf %349, %347 : vector<2x32xf32>
    %351 = arith.mulf %342, %297 : vector<2x32xf32>
    %352 = arith.addf %350, %351 : vector<2x32xf32>
    %cst_63 = arith.constant dense<0.000000e+00> : vector<2x128xf32>
    %353 = tpu.matmul %326, %3, %cst_63 {dimension_numbers = #tpu.dot_dimension_numbers<[1], [0], [0], [1], [0, 0, 1, 1], [], []>} : vector<2x32xf32>, vector<32x128xf32>, vector<2x128xf32> -> vector<2x128xf32>
    %354 = vector.extract_strided_slice %20 {offsets = [0, 192], sizes = [2, 32], strides = [1, 1]} : vector<2x768xf32> to vector<2x32xf32>
    %355 = vector.extract_strided_slice %353 {offsets = [0, 0], sizes = [2, 32], strides = [1, 1]} : vector<2x128xf32> to vector<2x32xf32>
    %356 = arith.addf %354, %355 : vector<2x32xf32>
    %357 = arith.negf %356 : vector<2x32xf32>
    %358 = math.exp %357 : vector<2x32xf32>
    %cst_64 = arith.constant 1.000000e+00 : f32
    %359 = vector.broadcast %cst_64 : f32 to vector<2x32xf32>
    %360 = arith.addf %359, %358 : vector<2x32xf32>
    %361 = arith.divf %359, %360 : vector<2x32xf32>
    %362 = vector.extract_strided_slice %20 {offsets = [0, 448], sizes = [2, 32], strides = [1, 1]} : vector<2x768xf32> to vector<2x32xf32>
    %363 = vector.extract_strided_slice %353 {offsets = [0, 32], sizes = [2, 32], strides = [1, 1]} : vector<2x128xf32> to vector<2x32xf32>
    %364 = arith.addf %362, %363 : vector<2x32xf32>
    %365 = arith.negf %364 : vector<2x32xf32>
    %366 = math.exp %365 : vector<2x32xf32>
    %cst_65 = arith.constant 1.000000e+00 : f32
    %367 = vector.broadcast %cst_65 : f32 to vector<2x32xf32>
    %368 = arith.addf %367, %366 : vector<2x32xf32>
    %369 = arith.divf %367, %368 : vector<2x32xf32>
    %370 = vector.extract_strided_slice %20 {offsets = [0, 704], sizes = [2, 32], strides = [1, 1]} : vector<2x768xf32> to vector<2x32xf32>
    %371 = vector.extract_strided_slice %353 {offsets = [0, 64], sizes = [2, 32], strides = [1, 1]} : vector<2x128xf32> to vector<2x32xf32>
    %372 = vector.broadcast %7 : vector<1x32xf32> to vector<2x32xf32>
    %373 = arith.addf %371, %372 : vector<2x32xf32>
    %374 = arith.mulf %361, %373 : vector<2x32xf32>
    %375 = arith.addf %370, %374 : vector<2x32xf32>
    %376 = math.tanh %375 : vector<2x32xf32>
    %cst_66 = arith.constant 1.000000e+00 : f32
    %377 = vector.broadcast %cst_66 : f32 to vector<2x32xf32>
    %378 = arith.subf %377, %369 : vector<2x32xf32>
    %379 = arith.mulf %378, %376 : vector<2x32xf32>
    %380 = arith.mulf %369, %326 : vector<2x32xf32>
    %381 = arith.addf %379, %380 : vector<2x32xf32>
    %382 = tpu.concatenate %381, %352 in 1 : vector<2x32xf32>, vector<2x32xf32> -> vector<2x64xf32>
    %cst_67 = arith.constant dense<0.000000e+00> : vector<2x128xf32>
    %383 = tpu.matmul %382, %4, %cst_67 {dimension_numbers = #tpu.dot_dimension_numbers<[1], [0], [0], [1], [0, 0, 1, 1], [], []>} : vector<2x64xf32>, vector<64x128xf32>, vector<2x128xf32> -> vector<2x128xf32>
    %384 = vector.broadcast %6 : vector<1x128xf32> to vector<2x128xf32>
    %385 = arith.addf %383, %384 : vector<2x128xf32>
    %386 = vector.extract_strided_slice %385 {offsets = [0, 0], sizes = [2, 32], strides = [1, 1]} : vector<2x128xf32> to vector<2x32xf32>
    %387 = arith.negf %386 : vector<2x32xf32>
    %388 = math.exp %387 : vector<2x32xf32>
    %cst_68 = arith.constant 1.000000e+00 : f32
    %389 = vector.broadcast %cst_68 : f32 to vector<2x32xf32>
    %390 = arith.addf %389, %388 : vector<2x32xf32>
    %391 = arith.divf %389, %390 : vector<2x32xf32>
    %392 = vector.extract_strided_slice %385 {offsets = [0, 32], sizes = [2, 32], strides = [1, 1]} : vector<2x128xf32> to vector<2x32xf32>
    %393 = arith.negf %392 : vector<2x32xf32>
    %394 = math.exp %393 : vector<2x32xf32>
    %cst_69 = arith.constant 1.000000e+00 : f32
    %395 = vector.broadcast %cst_69 : f32 to vector<2x32xf32>
    %396 = arith.addf %395, %394 : vector<2x32xf32>
    %397 = arith.divf %395, %396 : vector<2x32xf32>
    %398 = vector.extract_strided_slice %385 {offsets = [0, 64], sizes = [2, 32], strides = [1, 1]} : vector<2x128xf32> to vector<2x32xf32>
    %399 = vector.extract_strided_slice %385 {offsets = [0, 96], sizes = [2, 32], strides = [1, 1]} : vector<2x128xf32> to vector<2x32xf32>
    %400 = arith.mulf %391, %399 : vector<2x32xf32>
    %401 = arith.addf %398, %400 : vector<2x32xf32>
    %402 = math.tanh %401 : vector<2x32xf32>
    %cst_70 = arith.constant 1.000000e+00 : f32
    %403 = vector.broadcast %cst_70 : f32 to vector<2x32xf32>
    %404 = arith.subf %403, %397 : vector<2x32xf32>
    %405 = arith.mulf %404, %402 : vector<2x32xf32>
    %406 = arith.mulf %397, %352 : vector<2x32xf32>
    %407 = arith.addf %405, %406 : vector<2x32xf32>
    %cst_71 = arith.constant dense<0.000000e+00> : vector<2x128xf32>
    %408 = tpu.matmul %381, %3, %cst_71 {dimension_numbers = #tpu.dot_dimension_numbers<[1], [0], [0], [1], [0, 0, 1, 1], [], []>} : vector<2x32xf32>, vector<32x128xf32>, vector<2x128xf32> -> vector<2x128xf32>
    %409 = vector.extract_strided_slice %20 {offsets = [0, 224], sizes = [2, 32], strides = [1, 1]} : vector<2x768xf32> to vector<2x32xf32>
    %410 = vector.extract_strided_slice %408 {offsets = [0, 0], sizes = [2, 32], strides = [1, 1]} : vector<2x128xf32> to vector<2x32xf32>
    %411 = arith.addf %409, %410 : vector<2x32xf32>
    %412 = arith.negf %411 : vector<2x32xf32>
    %413 = math.exp %412 : vector<2x32xf32>
    %cst_72 = arith.constant 1.000000e+00 : f32
    %414 = vector.broadcast %cst_72 : f32 to vector<2x32xf32>
    %415 = arith.addf %414, %413 : vector<2x32xf32>
    %416 = arith.divf %414, %415 : vector<2x32xf32>
    %417 = vector.extract_strided_slice %20 {offsets = [0, 480], sizes = [2, 32], strides = [1, 1]} : vector<2x768xf32> to vector<2x32xf32>
    %418 = vector.extract_strided_slice %408 {offsets = [0, 32], sizes = [2, 32], strides = [1, 1]} : vector<2x128xf32> to vector<2x32xf32>
    %419 = arith.addf %417, %418 : vector<2x32xf32>
    %420 = arith.negf %419 : vector<2x32xf32>
    %421 = math.exp %420 : vector<2x32xf32>
    %cst_73 = arith.constant 1.000000e+00 : f32
    %422 = vector.broadcast %cst_73 : f32 to vector<2x32xf32>
    %423 = arith.addf %422, %421 : vector<2x32xf32>
    %424 = arith.divf %422, %423 : vector<2x32xf32>
    %425 = vector.extract_strided_slice %20 {offsets = [0, 736], sizes = [2, 32], strides = [1, 1]} : vector<2x768xf32> to vector<2x32xf32>
    %426 = vector.extract_strided_slice %408 {offsets = [0, 64], sizes = [2, 32], strides = [1, 1]} : vector<2x128xf32> to vector<2x32xf32>
    %427 = vector.broadcast %7 : vector<1x32xf32> to vector<2x32xf32>
    %428 = arith.addf %426, %427 : vector<2x32xf32>
    %429 = arith.mulf %416, %428 : vector<2x32xf32>
    %430 = arith.addf %425, %429 : vector<2x32xf32>
    %431 = math.tanh %430 : vector<2x32xf32>
    %cst_74 = arith.constant 1.000000e+00 : f32
    %432 = vector.broadcast %cst_74 : f32 to vector<2x32xf32>
    %433 = arith.subf %432, %424 : vector<2x32xf32>
    %434 = arith.mulf %433, %431 : vector<2x32xf32>
    %435 = arith.mulf %424, %381 : vector<2x32xf32>
    %436 = arith.addf %434, %435 : vector<2x32xf32>
    %437 = tpu.concatenate %436, %407 in 1 : vector<2x32xf32>, vector<2x32xf32> -> vector<2x64xf32>
    %cst_75 = arith.constant dense<0.000000e+00> : vector<2x128xf32>
    %438 = tpu.matmul %437, %4, %cst_75 {dimension_numbers = #tpu.dot_dimension_numbers<[1], [0], [0], [1], [0, 0, 1, 1], [], []>} : vector<2x64xf32>, vector<64x128xf32>, vector<2x128xf32> -> vector<2x128xf32>
    %439 = vector.broadcast %6 : vector<1x128xf32> to vector<2x128xf32>
    %440 = arith.addf %438, %439 : vector<2x128xf32>
    %441 = vector.extract_strided_slice %440 {offsets = [0, 0], sizes = [2, 32], strides = [1, 1]} : vector<2x128xf32> to vector<2x32xf32>
    %442 = arith.negf %441 : vector<2x32xf32>
    %443 = math.exp %442 : vector<2x32xf32>
    %cst_76 = arith.constant 1.000000e+00 : f32
    %444 = vector.broadcast %cst_76 : f32 to vector<2x32xf32>
    %445 = arith.addf %444, %443 : vector<2x32xf32>
    %446 = arith.divf %444, %445 : vector<2x32xf32>
    %447 = vector.extract_strided_slice %440 {offsets = [0, 32], sizes = [2, 32], strides = [1, 1]} : vector<2x128xf32> to vector<2x32xf32>
    %448 = arith.negf %447 : vector<2x32xf32>
    %449 = math.exp %448 : vector<2x32xf32>
    %cst_77 = arith.constant 1.000000e+00 : f32
    %450 = vector.broadcast %cst_77 : f32 to vector<2x32xf32>
    %451 = arith.addf %450, %449 : vector<2x32xf32>
    %452 = arith.divf %450, %451 : vector<2x32xf32>
    %453 = vector.extract_strided_slice %440 {offsets = [0, 64], sizes = [2, 32], strides = [1, 1]} : vector<2x128xf32> to vector<2x32xf32>
    %454 = vector.extract_strided_slice %440 {offsets = [0, 96], sizes = [2, 32], strides = [1, 1]} : vector<2x128xf32> to vector<2x32xf32>
    %455 = arith.mulf %446, %454 : vector<2x32xf32>
    %456 = arith.addf %453, %455 : vector<2x32xf32>
    %457 = math.tanh %456 : vector<2x32xf32>
    %cst_78 = arith.constant 1.000000e+00 : f32
    %458 = vector.broadcast %cst_78 : f32 to vector<2x32xf32>
    %459 = arith.subf %458, %452 : vector<2x32xf32>
    %460 = arith.mulf %459, %457 : vector<2x32xf32>
    %461 = arith.mulf %452, %407 : vector<2x32xf32>
    %462 = arith.addf %460, %461 : vector<2x32xf32>
    %463 = tpu.concatenate %77, %132, %187, %242, %297, %352, %407, %462 in 0 : vector<2x32xf32>, vector<2x32xf32>, vector<2x32xf32>, vector<2x32xf32>, vector<2x32xf32>, vector<2x32xf32>, vector<2x32xf32>, vector<2x32xf32> -> vector<16x32xf32>
    %cst_79 = arith.constant dense<0.000000e+00> : vector<16x32xf32>
    %464 = tpu.matmul %463, %14, %cst_79 {dimension_numbers = #tpu.dot_dimension_numbers<[1], [0], [0], [1], [0, 0, 1, 1], [], []>} : vector<16x32xf32>, vector<32x32xf32>, vector<16x32xf32> -> vector<16x32xf32>
    %465 = vector.broadcast %8 : vector<1x32xf32> to vector<16x32xf32>
    %466 = arith.addf %464, %465 : vector<16x32xf32>
    %cst_80 = arith.constant dense<0.000000e+00> : vector<16xf32>
    %467 = vector.multi_reduction <add>, %466, %cst_80 [1] : vector<16x32xf32> to vector<16xf32>
    %468 = vector.shape_cast %467 : vector<16xf32> to vector<16x1xf32>
    %cst_81 = arith.constant 3.200000e+01 : f32
    %469 = vector.broadcast %cst_81 : f32 to vector<16x1xf32>
    %470 = arith.divf %468, %469 : vector<16x1xf32>
    %471 = vector.broadcast %470 : vector<16x1xf32> to vector<16x32xf32>
    %472 = arith.subf %466, %471 : vector<16x32xf32>
    %473 = arith.mulf %472, %472 : vector<16x32xf32>
    %cst_82 = arith.constant dense<0.000000e+00> : vector<16xf32>
    %474 = vector.multi_reduction <add>, %473, %cst_82 [1] : vector<16x32xf32> to vector<16xf32>
    %475 = vector.shape_cast %474 : vector<16xf32> to vector<16x1xf32>
    %cst_83 = arith.constant 3.200000e+01 : f32
    %476 = vector.broadcast %cst_83 : f32 to vector<16x1xf32>
    %477 = arith.divf %475, %476 : vector<16x1xf32>
    %478 = vector.broadcast %470 : vector<16x1xf32> to vector<16x32xf32>
    %479 = arith.subf %466, %478 : vector<16x32xf32>
    %cst_84 = arith.constant 9.99999974E-6 : f32
    %480 = vector.broadcast %cst_84 : f32 to vector<16x1xf32>
    %481 = arith.addf %477, %480 : vector<16x1xf32>
    %482 = math.rsqrt %481 : vector<16x1xf32>
    %483 = vector.broadcast %482 : vector<16x1xf32> to vector<16x32xf32>
    %484 = arith.mulf %479, %483 : vector<16x32xf32>
    %485 = vector.broadcast %10 : vector<1x32xf32> to vector<16x32xf32>
    %486 = arith.mulf %484, %485 : vector<16x32xf32>
    %487 = vector.broadcast %11 : vector<1x32xf32> to vector<16x32xf32>
    %488 = arith.addf %486, %487 : vector<16x32xf32>
    %489 = math.tanh %488 : vector<16x32xf32>
    %cst_85 = arith.constant dense<0.000000e+00> : vector<16x32xf32>
    %490 = tpu.matmul %489, %15, %cst_85 {dimension_numbers = #tpu.dot_dimension_numbers<[1], [0], [0], [1], [0, 0, 1, 1], [], []>} : vector<16x32xf32>, vector<32x32xf32>, vector<16x32xf32> -> vector<16x32xf32>
    %491 = vector.broadcast %9 : vector<1x32xf32> to vector<16x32xf32>
    %492 = arith.addf %490, %491 : vector<16x32xf32>
    %cst_86 = arith.constant dense<0.000000e+00> : vector<16x64xf32>
    %493 = tpu.matmul %492, %16, %cst_86 {dimension_numbers = #tpu.dot_dimension_numbers<[1], [0], [0], [1], [0, 0, 1, 1], [], []>} : vector<16x32xf32>, vector<32x64xf32>, vector<16x64xf32> -> vector<16x64xf32>
    %494 = vector.broadcast %12 : vector<1x64xf32> to vector<16x64xf32>
    %495 = arith.addf %493, %494 : vector<16x64xf32>
    %cst_87 = arith.constant 0.000000e+00 : f32
    %496 = vector.broadcast %cst_87 : f32 to vector<16x64xf32>
    %497 = arith.maximumf %495, %496 : vector<16x64xf32>
    %cst_88 = arith.constant dense<0.000000e+00> : vector<16x32xf32>
    %498 = tpu.matmul %497, %17, %cst_88 {dimension_numbers = #tpu.dot_dimension_numbers<[1], [0], [0], [1], [0, 0, 1, 1], [], []>} : vector<16x64xf32>, vector<64x32xf32>, vector<16x32xf32> -> vector<16x32xf32>
    %499 = vector.broadcast %13 : vector<1x32xf32> to vector<16x32xf32>
    %500 = arith.addf %498, %499 : vector<16x32xf32>
    %c0_89 = arith.constant 0 : index
    %c0_90 = arith.constant 0 : index
    %501 = vector.load %arg3[%c0_89, %c0_90] : memref<16x32xf32, #tpu.memory_space<vmem>>, vector<16x32xf32>
    tpu.vector_store %arg3[%c0_89, %c0_90], %500 {strides = array<i32>} : memref<16x32xf32, #tpu.memory_space<vmem>>, vector<16x32xf32>,
    return
  }
}

</mosaic_0001>

<bundles_post_ra>
// kernel: tpu_custom_call.1
= control target key start
LH: loop header
LB: loop body
LE: loop exit
PB: predicated region body
PF: predicated region fallthrough
CT: control target
= control target key end

     0   :  { %8 = vsyncpa [#allocation3], 0  ;;  %s2487_s0 = inlined_call_operand.hbm [shape: f32[2,16], index: 0, kind: input, shape index: {}]   ;;  %s2488_s1 = inlined_call_operand.hbm [shape: f32[24,768], index: 1, kind: input, shape index: {}]   ;;  %s2489_s2 = inlined_call_operand.hbm [shape: f32[200,128], index: 2, kind: input, shape index: {}]   ;;  %s2490_s3 = inlined_call_operand.hbm [shape: f32[16,32], index: 3, kind: output, shape index: {}]  }
   0x1   :  { %9 = vsyncpa [#allocation6], 0  ;;  %s26_s14 = sshll.u32 %s2488_s1, 4  ;;  %s27_s14 = int_to_ptr.hbm [resolvable:$true] %s26_s14 }
   0x2   :  { %10 = vsyncpa [#allocation4], 0  ;;  %s2015_s15 = smov [#allocation5]   ;;  %s16_s19 = sshll.u32 %s2487_s0, 4  ;;  %s17_s19 = int_to_ptr.hbm [resolvable:$true] %s16_s19 }
   0x3   :  { %s28_s16 = sshll.u32 %s2015_s15, 4  ;;  %s2016_s20 = smov 768   ;;  %s29_s16 = int_to_ptr.vmem [resolvable:$true] %s28_s16 }
   0x4   :  { %s2017_s21 = smov 48   ;;  %s2018_s22 = smov [#allocation2]  }
   0x5   :  { %34 = dma.hbm_to_vmem [thread:$0]  %s27_s14, 2304, %s29_s16, [#allocation6], %s2016_s20, %s2016_s20, %s2017_s21  }
   0x6   :  { %s18_s23 = sshll.u32 %s2018_s22, 4  ;;  %s39_s26 = sshll.u32 %s2489_s2, 4  ;;  %s19_s23 = int_to_ptr.vmem [resolvable:$true] %s18_s23  ;;  %s40_s26 = int_to_ptr.hbm [resolvable:$true] %s39_s26 }
   0x7   :  { %21 = dma.hbm_to_vmem [thread:$0]  %s17_s19, 32, %s19_s23, [#allocation3]  }
   0x8   :  { %s2019_s1 = smov [#allocation7]   ;;  %s2020_s28 = smov 128  }
   0x9   :  { %s41_s27 = sshll.u32 %s2019_s1, 4  ;;  %s2021_s29 = smov 8   ;;  %s42_s27 = int_to_ptr.vmem [resolvable:$true] %s41_s27 }
   0xa   :  { %47 = dma.hbm_to_vmem [thread:$0]  %s40_s26, 3200, %s42_s27, [#allocation6], %s2020_s28, %s2020_s28, %s2021_s29  }
   0xb   :  { %2009 = dma.done.wait [#allocation3], 32  }
   0xc   :  { %2010 = vsyncadd [#allocation3], 4294967264 }
   0xd   :  { %2011 = dma.done.wait [#allocation6], 5504  }
   0xe   :  { %2012 = vsyncadd [#allocation6], 4294961792  ;;  %v69_v0 = vld [vmem:[#allocation5 + $0x40] sm:$0xff]  ;;  %v63_v1 = vld [vmem:[#allocation5 + $0x10] sm:$0xff]  ;;  %vm115_vm0 = vcmask 130048   ;;  %s2022_s0 = smov 64  }
   0xf   :  { %173 = vmatpush.msra.mxu2 %v69_v0  ;;  %v2060_v2 = vld [vmem:[#allocation2] sm:$0x3]  ;;  %v2062_v3 = vld [vmem:[#allocation7 + $0x18] sm:$0xff]  ;;  %v67_v4 = vld [vmem:[#allocation5 + $0x30] sm:$0xff]  ;;  %v2023_v13 = vmov 0.0   ;;  %s2024_s2 = smov 96  }
  0x10   :  { %v61_v5 = vld [vmem:[#allocation5] sm:$0xff]  ;;  %133 = vmatpush.msra.mxu0 %v67_v4  ;;  %v2064_v6 = vld [vmem:[#allocation7 + $0x60] sm:$0xff]  ;;  %v2072_v10 = vld [vmem:[#allocation7 + $0x8] sm:$0xff]  ;;  %vm239_vm9 = vcmask 261120   ;;  %vm326_vm10 = vcmask 523264   ;;  %s2025_s30 = smov 32  }
  0x11   :  { %174 = vmatpush.msra.mxu2 %v63_v1  ;;  %v2068_v7 = vld [vmem:[#allocation7 + $0x10] sm:$0xff]  ;;  %v307_v8 = vperm.slane %v2064_v6, 1  ;;  %v71_v9 = vld [vmem:[#allocation5 + $0x50] sm:$0xff]  ;;  %v68_v27 = vld [vmem:[#allocation5 + $0x38] sm:$0xff]  ;;  %s2027_s4 = smov [#allocation8]   ;;  %s1674_s8 = sshll.u32 %s2490_s3, 4  ;;  %s1675_s8 = int_to_ptr.hbm [resolvable:$true] %s1674_s8 }
  0x12   :  { %1690 = vmatmul.msk.f32.vlgmr.msra.gmra.mxu2 %vm115_vm0, %v2060_v2  ;;  %134 = vmatpush.msra.mxu0 %v61_v5  ;;  %v65_v11 = vld [vmem:[#allocation5 + $0x20] sm:$0xff]  ;;  %v2078_v12 = vld [vmem:[#allocation7] sm:$0xff]  ;;  %v62_v29 = vld [vmem:[#allocation5 + $0x8] sm:$0xff]  ;;  %s1672_s5 = sshll.u32 %s2027_s4, 4  ;;  %s1673_s5 = int_to_ptr.vmem [resolvable:$true] %s1672_s5 }
  0x13   :  { %255 = vmatpush.msrb.mxu2 %v2062_v3  ;;  %1688 = vmatmul.msk.f32.vlgmr.msra.gmra.mxu0 %vm115_vm0, %v2060_v2  ;;  %v74_v18 = vld [vmem:[#allocation5 + $0x60] ss:$8 sm:$0xf] }
  0x14   :  { %309 = vrot.lane.b32.xlu0 %v307_v8, %s2022_s0  ;;  %213 = vmatpush.msrb.mxu0 %v71_v9  ;;  %v75_v19 = vld [vmem:[#allocation5 + $0x60] ss:$8 sm:$0x30]  ;;  %v64_v31 = vld [vmem:[#allocation5 + $0x18] sm:$0xff]  ;;  %v2124_v37 = vld [vmem:[#allocation7 + $0x40] sm:$0xff] }
  0x15   :  { %256 = vmatpush.msrb.mxu2 %v2068_v7  ;;  %v2101_v20 = vor.u32 %v75_v19, %v74_v18  ;;  %153 = vmatpush.msra.mxu3 %v68_v27  ;;  %v70_v30 = vld [vmem:[#allocation5 + $0x48] sm:$0xff]  ;;  %v2116_v33 = vld [vmem:[#allocation7 + $0x50] sm:$0xff]  ;;  %v2120_v34 = vld [vmem:[#allocation7 + $0x48] sm:$0xff]  ;;  %v2183_v27 = vperm.slane %v2064_v6, 0 }
  0x16   :  { %214 = vmatpush.msrb.mxu0 %v65_v11  ;;  %v2112_v32 = vld [vmem:[#allocation7 + $0x58] sm:$0xff]  ;;  %v2134_v40 = vld [vmem:[#allocation7 + $0x30] sm:$0xff]  ;;  %v2140_v43 = vld [vmem:[#allocation7 + $0x28] sm:$0xff] }
  0x17   :  { %257 = vmatpush.msrb.mxu2 %v2072_v10  ;;  %v103_v21 = vperm.slane %v2101_v20, 0  ;;  %154 = vmatpush.msra.mxu3 %v62_v29  ;;  %v105_v36 = vperm.slane %v2101_v20, 2  ;;  %v2127_v38 = vld [vmem:[#allocation7 + $0x38] sm:$0xff]  ;;  %v2145_v46 = vld [vmem:[#allocation7 + $0x20] sm:$0xff]  ;;  %v107_v55 = vperm.slane %v2101_v20, 4 }
  0x18   :  { %403 = vmatpush.msra.mxu0 %v2062_v3  ;;  %1689 = vmatmul.msk.f32.vlgmr.msra.gmra.mxu3 %vm115_vm0, %v2060_v2 }
  0x19   :  { %258 = vmatpush.msrb.mxu2 %v2078_v12  ;;  %193 = vmatpush.msrb.mxu3 %v70_v30 }
  0x1a   :  { %259 = vmatmul.f32.vlgmr.msrb.gmra.mxu2 %v2023_v13  ;;  %404 = vmatpush.msra.mxu0 %v2068_v7 }
  0x1b   :  { %550 = vmatpush.msra.mxu2 %v2062_v3  ;;  %1692 = vmatmul.msk.f32.vlgmr.msrb.gmra.mxu0 %vm115_vm0, %v2060_v2 }
  0x1c   :  { %405 = vmatpush.msra.mxu0 %v2072_v10  ;;  %194 = vmatpush.msrb.mxu3 %v64_v31 }
  0x1d   :  { %551 = vmatpush.msra.mxu2 %v2068_v7 }
  0x1e   :  { %406 = vmatpush.msra.mxu0 %v2078_v12  ;;  %338 = vmatpush.msra.mxu3 %v2112_v32 }
  0x1f   :  { %552 = vmatpush.msra.mxu2 %v2072_v10 }
  0x20   :  { %632 = vmatpush.msrb.mxu0 %v2112_v32  ;;  %339 = vmatpush.msra.mxu3 %v2116_v33 }
  0x21   :  { %553 = vmatpush.msra.mxu2 %v2078_v12  ;;  %1691 = vmatmul.msk.f32.vlgmr.msrb.gmra.mxu3 %vm115_vm0, %v2060_v2 }
  0x22   :  { %633 = vmatpush.msrb.mxu0 %v2116_v33  ;;  %340 = vmatpush.msra.mxu3 %v2120_v34 }
  0x23   :  { %696 = vmatpush.msrb.mxu2 %v2062_v3 }
  0x24   :  { %634 = vmatpush.msrb.mxu0 %v2120_v34  ;;  %341 = vmatpush.msra.mxu3 %v2124_v37 }
  0x25   :  { %697 = vmatpush.msrb.mxu2 %v2068_v7 }
  0x26   :  { %635 = vmatpush.msrb.mxu0 %v2124_v37  ;;  %342 = vmatpush.msra.mxu3 %v2127_v38 }
  0x27   :  { %698 = vmatpush.msrb.mxu2 %v2072_v10 }
  0x28   :  { %636 = vmatpush.msrb.mxu0 %v2127_v38  ;;  %343 = vmatpush.msra.mxu3 %v2134_v40 }
  0x29   :  { %699 = vmatpush.msrb.mxu2 %v2078_v12 }
  0x2a   :  { %637 = vmatpush.msrb.mxu0 %v2134_v40  ;;  %344 = vmatpush.msra.mxu3 %v2140_v43 }
  0x2c   :  { %638 = vmatpush.msrb.mxu0 %v2140_v43  ;;  %345 = vmatpush.msra.mxu3 %v2145_v46 }
  0x2e   :  { %639 = vmatpush.msrb.mxu0 %v2145_v46  ;;  %782 = vmatpush.msrb.mxu3 %v2112_v32 }
  0x30   :  { %783 = vmatpush.msrb.mxu3 %v2116_v33 }
  0x32   :  { %784 = vmatpush.msrb.mxu3 %v2120_v34 }
  0x34   :  { %785 = vmatpush.msrb.mxu3 %v2124_v37 }
  0x36   :  { %786 = vmatpush.msrb.mxu3 %v2127_v38 }
  0x38   :  { %787 = vmatpush.msrb.mxu3 %v2134_v40 }
  0x3a   :  { %788 = vmatpush.msrb.mxu3 %v2140_v43 }
  0x3c   :  { %789 = vmatpush.msrb.mxu3 %v2145_v46 }
  0x86   :  { %v2096_v15 = vpop.permute.xlu0 %309 }
  0x90   :  { %v136_v22 = vpop.f32.mrf.mxu0 }
  0x91   :  { %v2104_v23 = vadd.f32 %v136_v22, %v103_v21 }
  0x95   :  { %v176_v14 = vpop.f32.mrf.mxu2 }
  0x96   :  { %v2136_v41 = vadd.f32 %v176_v14, %v105_v36 }
  0x98   :  { %v216_v58 = vpop.f32.mrf.mxu0 }
  0x99   :  { %v2161_v61 = vadd.f32 %v216_v58, %v107_v55 }
  0x9d   :  { %v260_v16 = vpop.f32.mrf.mxu2 }
  0x9e   :  { %284 = vrot.lane.b32.xlu0 %v260_v16, %s2024_s2  ;;  %v312_v17 = vadd.f32 %v2096_v15, %v260_v16  ;;  %v263_v24 = vadd.f32 %v260_v16, %v2104_v23 }
  0xa0   :  { %314 = vrot.lane.b32.xlu1 %v312_v17, %s2022_s0  ;;  %v1694_v25 = vmul.f32 -1.442695, %v263_v24  ;;  %v2177_v24 = vpop.f32.mrf.mxu3 }
  0xa2   :  { %1774 = vpow2.f32 %v1694_v25 }
  0xa8   :  { %v1775_v26 = vpop.eup %1774  ;;  %v2179_v25 = vpop.f32.mrf.mxu3 }
  0xa9   :  { %v2107_v28 = vadd.f32 1.0, %v1775_v26 }
  0xab   :  { %1776 = vrcp.f32 %v2107_v28  ;;  %v279_v51 = vand.u32 2147483648, %v2107_v28  ;;  %vm273_vm2 = vweird.f32 %v2107_v28  ;;  %v277_v53 = vand.u32 2147483647, %v2107_v28 }
  0xad   :  { %v280_v57 = vor.u32 1.1754944e-38, %v279_v51  ;;  %vm278_vm4 = vcmp.eq.f32.partialorder %v277_v53, 8.507059e+37 }
  0xb1   :  { %v1777_v35 = vpop.eup %1776 }
  0xb2   :  { %v269_v39 = vmul.f32 %v1777_v35, %v2107_v28  ;;  %vm274_vm1 = vweird.f32 %v1777_v35 }
  0xb3   :  { %vm275_vm3 = vmor %vm273_vm2, %vm274_vm1 }
  0xb4   :  { %v270_v45 = vsub.f32 1.0, %v269_v39 }
  0xb6   :  { %v271_v48 = vmul.f32 %v1777_v35, %v270_v45 }
  0xb8   :  { %v272_v49 = vadd.f32 %v1777_v35, %v271_v48 }
  0xba   :  { %v276_v54 = vsel %vm275_vm3, %v1777_v35, %v272_v49 }
  0xbb   :  { %v281_v59 = vsel %vm278_vm4, %v280_v57, %v276_v54 }
 0x110   :  { %v285_v42 = vpop.permute.xlu0 %284 }
 0x111   :  { %v287_v44 = vadd.f32 %v285_v42, %v2136_v41 }
 0x112   :  { %v315_v56 = vpop.permute.xlu1 %314 }
 0x113   :  { %v1695_v47 = vmul.f32 -1.442695, %v287_v44  ;;  %v317_v60 = vmul.f32 %v315_v56, %v281_v59 }
 0x115   :  { %1778 = vpow2.f32 %v1695_v47  ;;  %v318_v0 = vadd.f32 %v317_v60, %v2161_v61 }
 0x11b   :  { %v1779_v50 = vpop.eup %1778 }
 0x11c   :  { %v291_v52 = vadd.f32 1.0, %v1779_v50 }
 0x11e   :  { %1780 = vrcp.f32 %v291_v52  ;;  %v303_v4 = vand.u32 2147483648, %v291_v52  ;;  %v301_v8 = vand.u32 2147483647, %v291_v52  ;;  %vm297_vm6 = vweird.f32 %v291_v52 }
 0x11f   :  { %1782 = vtanh.f32 %v318_v0 }
 0x120   :  { %v304_v11 = vor.u32 1.1754944e-38, %v303_v4  ;;  %vm302_vm8 = vcmp.eq.f32.partialorder %v301_v8, 8.507059e+37 }
 0x124   :  { %v1781_v62 = vpop.eup %1780 }
 0x125   :  { %v293_v63 = vmul.f32 %v1781_v62, %v291_v52  ;;  %vm298_vm5 = vweird.f32 %v1781_v62  ;;  %v1783_v17 = vpop.eup %1782 }
 0x126   :  { %vm299_vm7 = vmor %vm297_vm6, %vm298_vm5 }
 0x127   :  { %v294_v1 = vsub.f32 1.0, %v293_v63 }
 0x129   :  { %v295_v5 = vmul.f32 %v1781_v62, %v294_v1 }
 0x12b   :  { %v296_v9 = vadd.f32 %v1781_v62, %v295_v5 }
 0x12d   :  { %v300_v13 = vsel %vm299_vm7, %v1781_v62, %v296_v9 }
 0x12e   :  { %v305_v14 = vsel %vm302_vm8, %v304_v11, %v300_v13 }
 0x12f   :  { %v320_v16 = vsub.f32 1.0, %v305_v14  ;;  %v322_v19 = vmul.f32 0.0, %v305_v14 }
 0x131   :  { %v321_v18 = vmul.f32 %v1783_v17, %v320_v16 }
 0x133   :  { %v323_v21 = vadd.f32 %v322_v19, %v321_v18 }
 0x135   :  { %1698 = vmatmul.msk.f32.vlgmr.msra.gmra.mxu0 %vm239_vm9, %v323_v21  ;;  %v324_v22 = vsel %vm239_vm9, %v323_v21, 0.0 }
 0x136   :  { %1696 = vmatmul.msk.f32.vlgmr.msra.gmra.mxu3 %vm326_vm10, %v324_v22  ;;  %987 = vmatpush.msra.mxu0 %v2062_v3 }
 0x137   :  { %1134 = vmatpush.msra.mxu3 %v2062_v3 }
 0x138   :  { %988 = vmatpush.msra.mxu0 %v2068_v7 }
 0x139   :  { %1135 = vmatpush.msra.mxu3 %v2068_v7 }
 0x13a   :  { %989 = vmatpush.msra.mxu0 %v2072_v10 }
 0x13b   :  { %1136 = vmatpush.msra.mxu3 %v2072_v10 }
 0x13c   :  { %990 = vmatpush.msra.mxu0 %v2078_v12 }
 0x13d   :  { %1137 = vmatpush.msra.mxu3 %v2078_v12 }
 0x1b2   :  { %v408_v26 = vpop.f32.mrf.mxu0 }
 0x1b3   :  { %412 = vrot.lane.b32.xlu2 %v408_v26, %s2025_s30  ;;  %v455_v28 = vadd.f32 %v408_v26, %v2096_v15  ;;  %v435_v35 = vadd.f32 %v408_v26, %v2136_v41 }
 0x1b5   :  { %v1700_v6 = vmul.f32 -1.442695, %v435_v35 }
 0x1b9   :  { %v347_v29 = vpop.f32.mrf.mxu3 }
 0x1ba   :  { %v2187_v30 = vadd.f32 %v347_v29, %v2183_v27 }
 0x1bb   :  { %457 = vrot.lane.b32.xlu2 %v455_v28, %s2024_s2 }
 0x1bc   :  { %370 = vrot.lane.b32.xlu1 %v2187_v30, %s2025_s30  ;;  %v1697_v31 = vmul.f32 -1.442695, %v2187_v30 }
 0x1be   :  { %1784 = vpow2.f32 %v1697_v31 }
 0x1bf   :  { %1786 = vpow2.f32 %v1700_v6 }
 0x1c4   :  { %465 = vrot.lane.b32.xlu1 %v323_v21, %s2025_s30  ;;  %v1785_v36 = vpop.eup %1784 }
 0x1c5   :  { %v353_v39 = vadd.f32 1.0, %v1785_v36  ;;  %v1787_v45 = vpop.eup %1786 }
 0x1c6   :  { %v439_v48 = vadd.f32 1.0, %v1787_v45 }
 0x1c7   :  { %1788 = vrcp.f32 %v353_v39  ;;  %v365_v8 = vand.u32 2147483648, %v353_v39  ;;  %vm359_vm15 = vweird.f32 %v353_v39  ;;  %v363_v11 = vand.u32 2147483647, %v353_v39 }
 0x1c8   :  { %v451_v22 = vand.u32 2147483648, %v439_v48  ;;  %vm445_vm5 = vweird.f32 %v439_v48  ;;  %v449_v26 = vand.u32 2147483647, %v439_v48 }
 0x1c9   :  { %v366_v21 = vor.u32 1.1754944e-38, %v365_v8  ;;  %vm364_vm4 = vcmp.eq.f32.partialorder %v363_v11, 8.507059e+37 }
 0x1ca   :  { %v452_v36 = vor.u32 1.1754944e-38, %v451_v22  ;;  %vm450_vm7 = vcmp.eq.f32.partialorder %v449_v26, 8.507059e+37 }
 0x1cd   :  { %v1789_v49 = vpop.eup %1788 }
 0x1ce   :  { %v355_v52 = vmul.f32 %v1789_v49, %v353_v39  ;;  %vm360_vm12 = vweird.f32 %v1789_v49 }
 0x1cf   :  { %vm361_vm2 = vmor %vm359_vm15, %vm360_vm12 }
 0x1d0   :  { %v356_v54 = vsub.f32 1.0, %v355_v52 }
 0x1d2   :  { %v357_v58 = vmul.f32 %v1789_v49, %v356_v54 }
 0x1d4   :  { %v358_v1 = vadd.f32 %v1789_v49, %v357_v58 }
 0x1d6   :  { %v362_v17 = vsel %vm361_vm2, %v1789_v49, %v358_v1 }
 0x1d7   :  { %v367_v31 = vsel %vm364_vm4, %v366_v21, %v362_v17 }
 0x20d   :  { %v413_v42 = vpop.permute.xlu2 %412 }
 0x20e   :  { %v415_v44 = vadd.f32 %v413_v42, %v2104_v23 }
 0x210   :  { %v1699_v47 = vmul.f32 -1.442695, %v415_v44 }
 0x212   :  { %1790 = vpow2.f32 %v1699_v47 }
 0x213   :  { %1792 = vrcp.f32 %v439_v48 }
 0x215   :  { %v458_v16 = vpop.permute.xlu2 %457 }
 0x218   :  { %v1791_v50 = vpop.eup %1790 }
 0x219   :  { %v419_v51 = vadd.f32 1.0, %v1791_v50  ;;  %v1793_v53 = vpop.eup %1792 }
 0x21a   :  { %v441_v55 = vmul.f32 %v1793_v53, %v439_v48  ;;  %vm446_vm3 = vweird.f32 %v1793_v53  ;;  %v72_v48 = vld [vmem:[#allocation5 + $0x58] sm:$0xff] }
 0x21b   :  { %1794 = vrcp.f32 %v419_v51  ;;  %v431_v62 = vand.u32 2147483648, %v419_v51  ;;  %v429_v0 = vand.u32 2147483647, %v419_v51  ;;  %vm425_vm13 = vweird.f32 %v419_v51  ;;  %vm447_vm6 = vmor %vm445_vm5, %vm446_vm3  ;;  %233 = vmatpush.msra.mxu1 %v72_v48 }
 0x21c   :  { %v442_v59 = vsub.f32 1.0, %v441_v55 }
 0x21d   :  { %v432_v9 = vor.u32 1.1754944e-38, %v431_v62  ;;  %vm430_vm1 = vcmp.eq.f32.partialorder %v429_v0, 8.507059e+37 }
 0x21e   :  { %v443_v4 = vmul.f32 %v1793_v53, %v442_v59 }
 0x220   :  { %v444_v18 = vadd.f32 %v1793_v53, %v443_v4 }
 0x221   :  { %v1795_v56 = vpop.eup %1794 }
 0x222   :  { %v421_v57 = vmul.f32 %v1795_v56, %v419_v51  ;;  %vm426_vm11 = vweird.f32 %v1795_v56  ;;  %v448_v6 = vsel %vm447_vm6, %v1793_v53, %v444_v18  ;;  %v66_v51 = vld [vmem:[#allocation5 + $0x28] sm:$0xff] }
 0x223   :  { %vm427_vm14 = vmor %vm425_vm13, %vm426_vm11  ;;  %v453_v39 = vsel %vm450_vm7, %v452_v36, %v448_v6  ;;  %234 = vmatpush.msra.mxu1 %v66_v51 }
 0x224   :  { %v422_v60 = vsub.f32 1.0, %v421_v57  ;;  %v463_v42 = vsub.f32 1.0, %v453_v39  ;;  %1693 = vmatmul.msk.f32.vlgmr.msra.gmra.mxu1 %vm115_vm0, %v2060_v2 }
 0x225   :  { %486 = vmatpush.msrb.mxu1 %v2112_v32 }
 0x226   :  { %v423_v63 = vmul.f32 %v1795_v56, %v422_v60 }
 0x227   :  { %487 = vmatpush.msrb.mxu1 %v2116_v33 }
 0x228   :  { %v424_v5 = vadd.f32 %v1795_v56, %v423_v63 }
 0x229   :  { %488 = vmatpush.msrb.mxu1 %v2120_v34 }
 0x22a   :  { %v428_v13 = vsel %vm427_vm14, %v1795_v56, %v424_v5  ;;  %v386_v56 = vmul.f32 0.0, %v367_v31 }
 0x22b   :  { %v433_v14 = vsel %vm430_vm1, %v432_v9, %v428_v13  ;;  %489 = vmatpush.msrb.mxu1 %v2124_v37 }
 0x22c   :  { %v460_v19 = vmul.f32 %v458_v16, %v433_v14 }
 0x22d   :  { %490 = vmatpush.msrb.mxu1 %v2127_v38 }
 0x22e   :  { %v461_v28 = vadd.f32 %v460_v19, %v2161_v61  ;;  %v371_v29 = vpop.permute.xlu1 %370 }
 0x22f   :  { %v373_v35 = vmul.f32 %v371_v29, %v367_v31  ;;  %491 = vmatpush.msrb.mxu1 %v2134_v40 }
 0x230   :  { %1796 = vtanh.f32 %v461_v28 }
 0x231   :  { %375 = vrot.lane.b32.xlu0 %v373_v35, %s2022_s0  ;;  %492 = vmatpush.msrb.mxu1 %v2140_v43 }
 0x233   :  { %493 = vmatpush.msrb.mxu1 %v2145_v46 }
 0x235   :  { %846 = vmatpush.msra.mxu1 %v2062_v3 }
 0x236   :  { %v1797_v44 = vpop.eup %1796  ;;  %v466_v45 = vpop.permute.xlu1 %465 }
 0x237   :  { %v464_v47 = vmul.f32 %v1797_v44, %v463_v42  ;;  %v468_v49 = vmul.f32 %v466_v45, %v453_v39  ;;  %847 = vmatpush.msra.mxu1 %v2068_v7 }
 0x239   :  { %v469_v50 = vadd.f32 %v468_v49, %v464_v47  ;;  %848 = vmatpush.msra.mxu1 %v2072_v10 }
 0x23b   :  { %471 = vrot.lane.b32.xlu0 %v469_v50, %s2024_s2  ;;  %849 = vmatpush.msra.mxu1 %v2078_v12 }
 0x2a1   :  { %v2240_v62 = vpop.f32.mrf.mxu1 }
 0x2a3   :  { %v376_v52 = vpop.permute.xlu0 %375 }
 0x2a4   :  { %v378_v2 = vadd.f32 %v376_v52, %v2187_v30  ;;  %v380_v30 = vsub.f32 1.0, %v367_v31 }
 0x2a6   :  { %1798 = vtanh.f32 %v378_v2 }
 0x2ac   :  { %v1799_v53 = vpop.eup %1798 }
 0x2ad   :  { %382 = vrot.lane.b32.xlu2 %v1799_v53, %s2024_s2  ;;  %v472_v54 = vpop.permute.xlu0 %471 }
 0x2ae   :  { %1703 = vmatmul.msk.f32.vlgmr.msra.gmra.mxu2 %vm239_vm9, %v472_v54 }
 0x2af   :  { %922 = vmatpush.msra.mxu2 %v2112_v32 }
 0x2b1   :  { %923 = vmatpush.msra.mxu2 %v2116_v33 }
 0x2b3   :  { %924 = vmatpush.msra.mxu2 %v2120_v34 }
 0x2b5   :  { %925 = vmatpush.msra.mxu2 %v2124_v37 }
 0x2b7   :  { %926 = vmatpush.msra.mxu2 %v2127_v38 }
 0x2b9   :  { %927 = vmatpush.msra.mxu2 %v2134_v40 }
 0x2bb   :  { %928 = vmatpush.msra.mxu2 %v2140_v43 }
 0x2bd   :  { %929 = vmatpush.msra.mxu2 %v2145_v46 }
 0x307   :  { %v383_v55 = vpop.permute.xlu2 %382 }
 0x308   :  { %v385_v57 = vmul.f32 %v383_v55, %v380_v30 }
 0x30a   :  { %v2224_v58 = vadd.f32 %v386_v56, %v385_v57 }
 0x30c   :  { %v474_v59 = vsel %vm239_vm9, %v472_v54, %v2224_v58 }
 0x30d   :  { %1701 = vmatmul.msk.f32.vlgmr.msrb.gmra.mxu1 %vm326_vm10, %v474_v59 }
 0x30e   :  { %1070 = vmatpush.msrb.mxu1 %v2112_v32 }
 0x310   :  { %1071 = vmatpush.msrb.mxu1 %v2116_v33 }
 0x312   :  { %1072 = vmatpush.msrb.mxu1 %v2120_v34 }
 0x314   :  { %1073 = vmatpush.msrb.mxu1 %v2124_v37 }
 0x316   :  { %1074 = vmatpush.msrb.mxu1 %v2127_v38 }
 0x318   :  { %1075 = vmatpush.msrb.mxu1 %v2134_v40 }
 0x31a   :  { %1076 = vmatpush.msrb.mxu1 %v2140_v43 }
 0x31c   :  { %1077 = vmatpush.msrb.mxu1 %v2145_v46 }
 0x331   :  { %v555_v60 = vpop.f32.mrf.mxu2 }
 0x332   :  { %582 = vrot.lane.b32.xlu0 %v555_v60, %s2025_s30  ;;  %559 = vrot.lane.b32.xlu2 %v555_v60, %s2022_s0  ;;  %v605_v52 = vadd.f32 %v555_v60, %v2096_v15 }
 0x33a   :  { %611 = vrot.lane.b32.xlu2 %v469_v50, %s2025_s30 }
 0x38a   :  { %v495_v63 = vpop.f32.mrf.mxu1 }
 0x38b   :  { %v2243_v0 = vadd.f32 %v495_v63, %v2183_v27 }
 0x38c   :  { %v560_v1 = vpop.permute.xlu2 %559 }
 0x38d   :  { %518 = vrot.lane.b32.xlu1 %v2243_v0, %s2025_s30  ;;  %v562_v4 = vadd.f32 %v560_v1, %v2104_v23  ;;  %v1702_v14 = vmul.f32 -1.442695, %v2243_v0 }
 0x38f   :  { %v1704_v5 = vmul.f32 -1.442695, %v562_v4 }
 0x391   :  { %1800 = vpow2.f32 %v1704_v5 }
 0x397   :  { %v1801_v11 = vpop.eup %1800 }
 0x398   :  { %v566_v16 = vadd.f32 1.0, %v1801_v11 }
 0x39a   :  { %v578_v39 = vand.u32 2147483648, %v566_v16  ;;  %vm572_vm8 = vweird.f32 %v566_v16  ;;  %v576_v44 = vand.u32 2147483647, %v566_v16 }
 0x39c   :  { %v579_v49 = vor.u32 1.1754944e-38, %v578_v39  ;;  %vm577_vm12 = vcmp.eq.f32.partialorder %v576_v44, 8.507059e+37 }
 0x3a4   :  { %v583_v8 = vpop.permute.xlu0 %582 }
 0x3a5   :  { %v585_v9 = vadd.f32 %v583_v8, %v2136_v41 }
 0x3a7   :  { %v1705_v13 = vmul.f32 -1.442695, %v585_v9 }
 0x3a9   :  { %1802 = vpow2.f32 %v1705_v13 }
 0x3aa   :  { %1804 = vpow2.f32 %v1702_v14 }
 0x3ab   :  { %1806 = vrcp.f32 %v566_v16 }
 0x3af   :  { %v1803_v17 = vpop.eup %1802 }
 0x3b0   :  { %v1805_v18 = vpop.eup %1804  ;;  %v589_v21 = vadd.f32 1.0, %v1803_v17 }
 0x3b1   :  { %v1807_v19 = vpop.eup %1806  ;;  %v501_v22 = vadd.f32 1.0, %v1805_v18  ;;  %v612_v18 = vpop.permute.xlu2 %611 }
 0x3b2   :  { %v568_v26 = vmul.f32 %v1807_v19, %v566_v16  ;;  %1808 = vrcp.f32 %v589_v21  ;;  %vm573_vm0 = vweird.f32 %v1807_v19  ;;  %v601_v30 = vand.u32 2147483648, %v589_v21 }
 0x3b3   :  { %1810 = vrcp.f32 %v501_v22  ;;  %vm574_vm11 = vmor %vm572_vm8, %vm573_vm0  ;;  %vm595_vm15 = vweird.f32 %v589_v21  ;;  %v599_v56 = vand.u32 2147483647, %v589_v21  ;;  %v513_v57 = vand.u32 2147483648, %v501_v22 }
 0x3b4   :  { %v569_v28 = vsub.f32 1.0, %v568_v26  ;;  %vm507_vm2 = vweird.f32 %v501_v22  ;;  %v511_v63 = vand.u32 2147483647, %v501_v22  ;;  %v602_v4 = vor.u32 1.1754944e-38, %v601_v30 }
 0x3b5   :  { %vm600_vm4 = vcmp.eq.f32.partialorder %v599_v56, 8.507059e+37  ;;  %v514_v60 = vor.u32 1.1754944e-38, %v513_v57 }
 0x3b6   :  { %v570_v31 = vmul.f32 %v1807_v19, %v569_v28  ;;  %vm512_vm5 = vcmp.eq.f32.partialorder %v511_v63, 8.507059e+37 }
 0x3b8   :  { %v1809_v29 = vpop.eup %1808  ;;  %v571_v36 = vadd.f32 %v1807_v19, %v570_v31 }
 0x3b9   :  { %v1811_v35 = vpop.eup %1810  ;;  %v591_v6 = vmul.f32 %v1809_v29, %v589_v21  ;;  %vm596_vm13 = vweird.f32 %v1809_v29 }
 0x3ba   :  { %v503_v42 = vmul.f32 %v1811_v35, %v501_v22  ;;  %v575_v47 = vsel %vm574_vm11, %v1807_v19, %v571_v36  ;;  %vm508_vm14 = vweird.f32 %v1811_v35  ;;  %vm597_vm1 = vmor %vm595_vm15, %vm596_vm13 }
 0x3bb   :  { %v592_v45 = vsub.f32 1.0, %v591_v6  ;;  %v580_v48 = vsel %vm577_vm12, %v579_v49, %v575_v47  ;;  %vm509_vm3 = vmor %vm507_vm2, %vm508_vm14 }
 0x3bc   :  { %v504_v50 = vsub.f32 1.0, %v503_v42  ;;  %v606_v53 = vmul.f32 %v605_v52, %v580_v48 }
 0x3bd   :  { %v593_v51 = vmul.f32 %v1809_v29, %v592_v45 }
 0x3be   :  { %v505_v2 = vmul.f32 %v1811_v35, %v504_v50  ;;  %v607_v59 = vadd.f32 %v606_v53, %v2161_v61 }
 0x3bf   :  { %v594_v54 = vadd.f32 %v1809_v29, %v593_v51 }
 0x3c0   :  { %v506_v55 = vadd.f32 %v1811_v35, %v505_v2  ;;  %1812 = vtanh.f32 %v607_v59 }
 0x3c1   :  { %v598_v1 = vsel %vm597_vm1, %v1809_v29, %v594_v54 }
 0x3c2   :  { %v510_v5 = vsel %vm509_vm3, %v1811_v35, %v506_v55  ;;  %v603_v8 = vsel %vm600_vm4, %v602_v4, %v598_v1 }
 0x3c3   :  { %v515_v11 = vsel %vm512_vm5, %v514_v60, %v510_v5  ;;  %v609_v14 = vsub.f32 1.0, %v603_v8  ;;  %v614_v19 = vmul.f32 %v612_v18, %v603_v8 }
 0x3c4   :  { %v528_v31 = vsub.f32 1.0, %v515_v11  ;;  %v534_v6 = vmul.f32 %v515_v11, %v2224_v58 }
 0x3c6   :  { %v1813_v16 = vpop.eup %1812 }
 0x3c7   :  { %v610_v17 = vmul.f32 %v1813_v16, %v609_v14 }
 0x3c9   :  { %v615_v21 = vadd.f32 %v614_v19, %v610_v17 }
 0x3ff   :  { %v519_v9 = vpop.permute.xlu1 %518 }
 0x400   :  { %v521_v13 = vmul.f32 %v519_v9, %v515_v11 }
 0x402   :  { %523 = vrot.lane.b32.xlu1 %v521_v13, %s2022_s0 }
 0x40a   :  { %617 = vrot.lane.b32.xlu1 %v615_v21, %s2022_s0 }
 0x474   :  { %v524_v22 = vpop.permute.xlu1 %523 }
 0x475   :  { %v526_v26 = vadd.f32 %v524_v22, %v2243_v0 }
 0x477   :  { %1814 = vtanh.f32 %v526_v26 }
 0x47c   :  { %v618_v28 = vpop.permute.xlu1 %617 }
 0x47d   :  { %v1815_v29 = vpop.eup %1814  ;;  %1708 = vmatmul.msk.f32.vlgmr.msrb.gmra.mxu2 %vm239_vm9, %v618_v28 }
 0x47e   :  { %530 = vrot.lane.b32.xlu0 %v1815_v29, %s2024_s2  ;;  %1280 = vmatpush.msrb.mxu2 %v2062_v3 }
 0x480   :  { %1281 = vmatpush.msrb.mxu2 %v2068_v7 }
 0x482   :  { %1282 = vmatpush.msrb.mxu2 %v2072_v10 }
 0x484   :  { %1283 = vmatpush.msrb.mxu2 %v2078_v12 }
 0x4f0   :  { %v531_v35 = vpop.permute.xlu0 %530 }
 0x4f1   :  { %v533_v0 = vmul.f32 %v531_v35, %v528_v31 }
 0x4f3   :  { %v2262_v36 = vadd.f32 %v534_v6, %v533_v0 }
 0x4f5   :  { %v620_v39 = vsel %vm239_vm9, %v618_v28, %v2262_v36 }
 0x4f6   :  { %1706 = vmatmul.msk.f32.vlgmr.msrb.gmra.mxu0 %vm326_vm10, %v620_v39 }
 0x4f7   :  { %1216 = vmatpush.msrb.mxu0 %v2112_v32 }
 0x4f9   :  { %1217 = vmatpush.msrb.mxu0 %v2116_v33 }
 0x4fb   :  { %1218 = vmatpush.msrb.mxu0 %v2120_v34 }
 0x4fd   :  { %1219 = vmatpush.msrb.mxu0 %v2124_v37 }
 0x4ff   :  { %1220 = vmatpush.msrb.mxu0 %v2127_v38 }
 0x500   :  { %v701_v3 = vpop.f32.mrf.mxu2 }
 0x501   :  { %728 = vrot.lane.b32.xlu1 %v701_v3, %s2022_s0  ;;  %705 = vrot.lane.b32.xlu0 %v701_v3, %s2024_s2  ;;  %v751_v12 = vadd.f32 %v701_v3, %v2096_v15 }
 0x502   :  { %1221 = vmatpush.msrb.mxu0 %v2134_v40 }
 0x504   :  { %1222 = vmatpush.msrb.mxu0 %v2140_v43 }
 0x506   :  { %1223 = vmatpush.msrb.mxu0 %v2145_v46 }
 0x509   :  { %761 = vrot.lane.b32.xlu1 %v615_v21, %s2025_s30 }
 0x573   :  { %v641_v7 = vpop.f32.mrf.mxu0  ;;  %v706_v44 = vpop.permute.xlu0 %705 }
 0x574   :  { %v2279_v10 = vadd.f32 %v641_v7, %v2183_v27  ;;  %v708_v45 = vadd.f32 %v706_v44, %v2104_v23  ;;  %v729_v47 = vpop.permute.xlu1 %728 }
 0x575   :  { %v731_v48 = vadd.f32 %v729_v47, %v2136_v41 }
 0x576   :  { %664 = vrot.lane.b32.xlu2 %v2279_v10, %s2025_s30  ;;  %v1707_v42 = vmul.f32 -1.442695, %v2279_v10  ;;  %v1709_v49 = vmul.f32 -1.442695, %v708_v45 }
 0x577   :  { %v1710_v52 = vmul.f32 -1.442695, %v731_v48 }
 0x578   :  { %1816 = vpow2.f32 %v1707_v42 }
 0x579   :  { %1818 = vpow2.f32 %v1709_v49 }
 0x57c   :  { %v762_v49 = vpop.permute.xlu1 %761 }
 0x57e   :  { %753 = vrot.lane.b32.xlu2 %v751_v12, %s2025_s30  ;;  %v1817_v50 = vpop.eup %1816 }
 0x57f   :  { %v647_v51 = vadd.f32 1.0, %v1817_v50  ;;  %v1819_v2 = vpop.eup %1818 }
 0x580   :  { %v712_v53 = vadd.f32 1.0, %v1819_v2 }
 0x581   :  { %1820 = vrcp.f32 %v647_v51  ;;  %v659_v5 = vand.u32 2147483648, %v647_v51  ;;  %vm653_vm7 = vweird.f32 %v647_v51  ;;  %v657_v60 = vand.u32 2147483647, %v647_v51 }
 0x582   :  { %1822 = vpow2.f32 %v1710_v52  ;;  %v724_v21 = vand.u32 2147483648, %v712_v53  ;;  %vm718_vm12 = vweird.f32 %v712_v53  ;;  %v722_v22 = vand.u32 2147483647, %v712_v53 }
 0x583   :  { %1824 = vrcp.f32 %v712_v53  ;;  %v660_v13 = vor.u32 1.1754944e-38, %v659_v5  ;;  %vm658_vm8 = vcmp.eq.f32.partialorder %v657_v60, 8.507059e+37 }
 0x584   :  { %v725_v29 = vor.u32 1.1754944e-38, %v724_v21  ;;  %vm723_vm14 = vcmp.eq.f32.partialorder %v722_v22, 8.507059e+37 }
 0x587   :  { %v1821_v54 = vpop.eup %1820 }
 0x588   :  { %v1823_v30 = vpop.eup %1822  ;;  %v649_v55 = vmul.f32 %v1821_v54, %v647_v51  ;;  %vm654_vm6 = vweird.f32 %v1821_v54 }
 0x589   :  { %v735_v56 = vadd.f32 1.0, %v1823_v30  ;;  %v1825_v23 = vpop.eup %1824  ;;  %vm655_vm0 = vmor %vm653_vm7, %vm654_vm6 }
 0x58a   :  { %v650_v57 = vsub.f32 1.0, %v649_v55  ;;  %v714_v63 = vmul.f32 %v1825_v23, %v712_v53  ;;  %vm719_vm11 = vweird.f32 %v1825_v23 }
 0x58b   :  { %1826 = vrcp.f32 %v735_v56  ;;  %vm720_vm13 = vmor %vm718_vm12, %vm719_vm11  ;;  %v747_v0 = vand.u32 2147483648, %v735_v56  ;;  %vm741_vm1 = vweird.f32 %v735_v56  ;;  %v745_v3 = vand.u32 2147483647, %v735_v56 }
 0x58c   :  { %v651_v59 = vmul.f32 %v1821_v54, %v650_v57  ;;  %v715_v41 = vsub.f32 1.0, %v714_v63 }
 0x58d   :  { %v748_v42 = vor.u32 1.1754944e-38, %v747_v0  ;;  %vm746_vm3 = vcmp.eq.f32.partialorder %v745_v3, 8.507059e+37 }
 0x58e   :  { %v652_v4 = vadd.f32 %v1821_v54, %v651_v59  ;;  %v716_v11 = vmul.f32 %v1825_v23, %v715_v41 }
 0x590   :  { %v656_v9 = vsel %vm655_vm0, %v1821_v54, %v652_v4  ;;  %v717_v19 = vadd.f32 %v1825_v23, %v716_v11 }
 0x591   :  { %v1827_v1 = vpop.eup %1826  ;;  %v661_v17 = vsel %vm658_vm8, %v660_v13, %v656_v9 }
 0x592   :  { %v737_v8 = vmul.f32 %v1827_v1, %v735_v56  ;;  %v721_v28 = vsel %vm720_vm13, %v1825_v23, %v717_v19  ;;  %vm742_vm15 = vweird.f32 %v1827_v1  ;;  %v674_v54 = vsub.f32 1.0, %v661_v17 }
 0x593   :  { %v726_v35 = vsel %vm723_vm14, %v725_v29, %v721_v28  ;;  %vm743_vm2 = vmor %vm741_vm1, %vm742_vm15  ;;  %v680_v55 = vmul.f32 %v661_v17, %v2262_v36 }
 0x594   :  { %v738_v14 = vsub.f32 1.0, %v737_v8 }
 0x596   :  { %v739_v26 = vmul.f32 %v1827_v1, %v738_v14 }
 0x598   :  { %v740_v31 = vadd.f32 %v1827_v1, %v739_v26 }
 0x59a   :  { %v744_v12 = vsel %vm743_vm2, %v1827_v1, %v740_v31 }
 0x59b   :  { %v749_v44 = vsel %vm746_vm3, %v748_v42, %v744_v12 }
 0x59c   :  { %v759_v45 = vsub.f32 1.0, %v749_v44  ;;  %v764_v50 = vmul.f32 %v762_v49, %v749_v44 }
 0x5d0   :  { %v665_v16 = vpop.permute.xlu2 %664 }
 0x5d1   :  { %v667_v18 = vmul.f32 %v665_v16, %v661_v17 }
 0x5d3   :  { %669 = vrot.lane.b32.xlu0 %v667_v18, %s2022_s0 }
 0x5d8   :  { %v754_v6 = vpop.permute.xlu2 %753 }
 0x5d9   :  { %v756_v39 = vmul.f32 %v754_v6, %v726_v35 }
 0x5db   :  { %v757_v7 = vadd.f32 %v756_v39, %v2161_v61 }
 0x5dd   :  { %1828 = vtanh.f32 %v757_v7 }
 0x5e3   :  { %v1829_v47 = vpop.eup %1828 }
 0x5e4   :  { %v760_v48 = vmul.f32 %v1829_v47, %v759_v45  ;;  %v108_v47 = vperm.slane %v2101_v20, 5 }
 0x5e6   :  { %v765_v51 = vadd.f32 %v764_v50, %v760_v48 }
 0x5e8   :  { %767 = vrot.lane.b32.xlu0 %v765_v51, %s2025_s30 }
 0x645   :  { %v670_v52 = vpop.permute.xlu0 %669 }
 0x646   :  { %v672_v2 = vadd.f32 %v670_v52, %v2279_v10 }
 0x648   :  { %1830 = vtanh.f32 %v672_v2  ;;  %v2334_v2 = vadd.f32 %v2240_v62, %v108_v47 }
 0x64e   :  { %v1831_v53 = vpop.eup %1830 }
 0x64f   :  { %676 = vrot.lane.b32.xlu2 %v1831_v53, %s2024_s2 }
 0x65a   :  { %v2293_v61 = vpop.permute.xlu0 %767 }
 0x65b   :  { %1713 = vmatmul.msk.f32.vlgmr.msra.gmra.mxu1 %vm239_vm9, %v2293_v61 }
 0x6a9   :  { %v677_v30 = vpop.permute.xlu2 %676 }
 0x6aa   :  { %v679_v56 = vmul.f32 %v677_v30, %v674_v54 }
 0x6ac   :  { %v2298_v57 = vadd.f32 %v680_v55, %v679_v56 }
 0x6ae   :  { %v770_v10 = vsel %vm239_vm9, %v2293_v61, %v2298_v57 }
 0x6af   :  { %1711 = vmatmul.msk.f32.vlgmr.msrb.gmra.mxu3 %vm326_vm10, %v770_v10 }
 0x6b0   :  { %1366 = vmatpush.msrb.mxu3 %v2112_v32 }
 0x6b2   :  { %1367 = vmatpush.msrb.mxu3 %v2116_v33 }
 0x6b4   :  { %1368 = vmatpush.msrb.mxu3 %v2120_v34  ;;  %v104_v34 = vperm.slane %v2101_v20, 1 }
 0x6b6   :  { %1369 = vmatpush.msrb.mxu3 %v2124_v37 }
 0x6b8   :  { %1370 = vmatpush.msrb.mxu3 %v2127_v38  ;;  %v2323_v38 = vadd.f32 %v2177_v24, %v104_v34 }
 0x6ba   :  { %1371 = vmatpush.msrb.mxu3 %v2134_v40 }
 0x6bc   :  { %1372 = vmatpush.msrb.mxu3 %v2140_v43  ;;  %v106_v43 = vperm.slane %v2101_v20, 3 }
 0x6be   :  { %1373 = vmatpush.msrb.mxu3 %v2145_v46  ;;  %v2328_v1 = vadd.f32 %v2179_v25, %v106_v43 }
 0x6d8   :  { %v851_v23 = vpop.f32.mrf.mxu1 }
 0x6d9   :  { %875 = vrot.lane.b32.xlu0 %v851_v23, %s2024_s2  ;;  %v898_v33 = vadd.f32 %v851_v23, %v2096_v15  ;;  %v854_v40 = vadd.f32 %v851_v23, %v2323_v38 }
 0x6db   :  { %v1714_v46 = vmul.f32 -1.442695, %v854_v40 }
 0x732   :  { %v791_v59 = vpop.f32.mrf.mxu3 }
 0x733   :  { %v2314_v32 = vadd.f32 %v791_v59, %v2183_v27 }
 0x735   :  { %814 = vrot.lane.b32.xlu1 %v2314_v32, %s2025_s30  ;;  %v1712_v37 = vmul.f32 -1.442695, %v2314_v32 }
 0x737   :  { %1832 = vpow2.f32 %v1712_v37 }
 0x738   :  { %1834 = vpow2.f32 %v1714_v46 }
 0x73d   :  { %900 = vrot.lane.b32.xlu1 %v898_v33, %s2022_s0  ;;  %v1833_v4 = vpop.eup %1832 }
 0x73e   :  { %v797_v5 = vadd.f32 1.0, %v1833_v4  ;;  %v1835_v8 = vpop.eup %1834 }
 0x73f   :  { %v858_v24 = vadd.f32 1.0, %v1835_v8 }
 0x740   :  { %1836 = vrcp.f32 %v797_v5  ;;  %v809_v26 = vand.u32 2147483648, %v797_v5  ;;  %vm803_vm5 = vweird.f32 %v797_v5  ;;  %v807_v28 = vand.u32 2147483647, %v797_v5 }
 0x741   :  { %v870_v42 = vand.u32 2147483648, %v858_v24  ;;  %vm864_vm8 = vweird.f32 %v858_v24  ;;  %v868_v44 = vand.u32 2147483647, %v858_v24 }
 0x742   :  { %v810_v6 = vor.u32 1.1754944e-38, %v809_v26  ;;  %vm808_vm7 = vcmp.eq.f32.partialorder %v807_v28, 8.507059e+37 }
 0x743   :  { %v871_v50 = vor.u32 1.1754944e-38, %v870_v42  ;;  %vm869_vm12 = vcmp.eq.f32.partialorder %v868_v44, 8.507059e+37 }
 0x746   :  { %v1837_v9 = vpop.eup %1836 }
 0x747   :  { %v799_v13 = vmul.f32 %v1837_v9, %v797_v5  ;;  %vm804_vm4 = vweird.f32 %v1837_v9 }
 0x748   :  { %vm805_vm6 = vmor %vm803_vm5, %vm804_vm4 }
 0x749   :  { %v800_v16 = vsub.f32 1.0, %v799_v13 }
 0x74b   :  { %v876_v63 = vpop.permute.xlu0 %875  ;;  %v801_v25 = vmul.f32 %v1837_v9, %v800_v16 }
 0x74c   :  { %v878_v41 = vadd.f32 %v876_v63, %v2328_v1 }
 0x74d   :  { %v802_v21 = vadd.f32 %v1837_v9, %v801_v25 }
 0x74e   :  { %v1715_v60 = vmul.f32 -1.442695, %v878_v41 }
 0x74f   :  { %v806_v31 = vsel %vm805_vm6, %v1837_v9, %v802_v21 }
 0x750   :  { %1838 = vpow2.f32 %v1715_v60  ;;  %v811_v3 = vsel %vm808_vm7, %v810_v6, %v806_v31 }
 0x751   :  { %1840 = vrcp.f32 %v858_v24  ;;  %v830_v41 = vmul.f32 %v811_v3, %v2298_v57 }
 0x756   :  { %v1839_v11 = vpop.eup %1838 }
 0x757   :  { %v882_v14 = vadd.f32 1.0, %v1839_v11  ;;  %v1841_v17 = vpop.eup %1840 }
 0x758   :  { %v860_v18 = vmul.f32 %v1841_v17, %v858_v24  ;;  %vm865_vm0 = vweird.f32 %v1841_v17 }
 0x759   :  { %1842 = vrcp.f32 %v882_v14  ;;  %vm866_vm11 = vmor %vm864_vm8, %vm865_vm0  ;;  %v894_v53 = vand.u32 2147483648, %v882_v14  ;;  %vm888_vm14 = vweird.f32 %v882_v14  ;;  %v892_v30 = vand.u32 2147483647, %v882_v14 }
 0x75a   :  { %v861_v22 = vsub.f32 1.0, %v860_v18 }
 0x75b   :  { %v895_v10 = vor.u32 1.1754944e-38, %v894_v53  ;;  %vm893_vm1 = vcmp.eq.f32.partialorder %v892_v30, 8.507059e+37 }
 0x75c   :  { %v862_v35 = vmul.f32 %v1841_v17, %v861_v22 }
 0x75e   :  { %v863_v12 = vadd.f32 %v1841_v17, %v862_v35 }
 0x75f   :  { %v1843_v19 = vpop.eup %1842 }
 0x760   :  { %v884_v29 = vmul.f32 %v1843_v19, %v882_v14  ;;  %v867_v49 = vsel %vm866_vm11, %v1841_v17, %v863_v12  ;;  %vm889_vm13 = vweird.f32 %v1843_v19 }
 0x761   :  { %v872_v48 = vsel %vm869_vm12, %v871_v50, %v867_v49  ;;  %vm890_vm15 = vmor %vm888_vm14, %vm889_vm13 }
 0x762   :  { %v885_v0 = vsub.f32 1.0, %v884_v29 }
 0x764   :  { %v886_v45 = vmul.f32 %v1843_v19, %v885_v0 }
 0x766   :  { %v887_v51 = vadd.f32 %v1843_v19, %v886_v45 }
 0x768   :  { %v891_v56 = vsel %vm890_vm15, %v1843_v19, %v887_v51 }
 0x769   :  { %v896_v20 = vsel %vm893_vm1, %v895_v10, %v891_v56 }
 0x76a   :  { %v906_v23 = vsub.f32 1.0, %v896_v20  ;;  %v908_v34 = vmul.f32 %v896_v20, %v2293_v61  ;;  %v824_v61 = vsub.f32 1.0, %v811_v3 }
 0x7a7   :  { %v815_v39 = vpop.permute.xlu1 %814 }
 0x7a8   :  { %v817_v7 = vmul.f32 %v815_v39, %v811_v3 }
 0x7aa   :  { %819 = vrot.lane.b32.xlu2 %v817_v7, %s2022_s0 }
 0x7af   :  { %v901_v52 = vpop.permute.xlu1 %900 }
 0x7b0   :  { %v903_v54 = vmul.f32 %v901_v52, %v872_v48 }
 0x7b2   :  { %v904_v55 = vadd.f32 %v903_v54, %v2334_v2 }
 0x7b4   :  { %1844 = vtanh.f32 %v904_v55 }
 0x7ba   :  { %v1845_v59 = vpop.eup %1844 }
 0x7bb   :  { %v907_v33 = vmul.f32 %v1845_v59, %v906_v23 }
 0x7bd   :  { %v909_v37 = vadd.f32 %v908_v34, %v907_v33 }
 0x7bf   :  { %1718 = vmatmul.msk.f32.vlgmr.msra.gmra.mxu0 %vm239_vm9, %v909_v37 }
 0x804   :  { %v820_v62 = vpop.permute.xlu2 %819 }
 0x805   :  { %v822_v40 = vadd.f32 %v820_v62, %v2314_v32 }
 0x807   :  { %1846 = vtanh.f32 %v822_v40 }
 0x80d   :  { %v1847_v43 = vpop.eup %1846 }
 0x80e   :  { %826 = vrot.lane.b32.xlu2 %v1847_v43, %s2024_s2 }
 0x83c   :  { %v992_v46 = vpop.f32.mrf.mxu0 }
 0x83d   :  { %v1039_v63 = vadd.f32 %v992_v46, %v2096_v15  ;;  %996 = vrot.lane.b32.xlu1 %v992_v46, %s2025_s30  ;;  %v1019_v16 = vadd.f32 %v992_v46, %v2328_v1 }
 0x83f   :  { %1041 = vrot.lane.b32.xlu2 %v1039_v63, %s2024_s2  ;;  %v1720_v25 = vmul.f32 -1.442695, %v1019_v16 }
 0x845   :  { %1049 = vrot.lane.b32.xlu1 %v909_v37, %s2025_s30 }
 0x868   :  { %v827_v4 = vpop.permute.xlu2 %826 }
 0x869   :  { %v829_v5 = vmul.f32 %v827_v4, %v824_v61 }
 0x86b   :  { %v2346_v60 = vadd.f32 %v830_v41, %v829_v5 }
 0x86d   :  { %v910_v32 = vsel %vm239_vm9, %v909_v37, %v2346_v60 }
 0x86e   :  { %1716 = vmatmul.msk.f32.vlgmr.msra.gmra.mxu2 %vm326_vm10, %v910_v32 }
 0x899   :  { %v1042_v48 = vpop.permute.xlu2 %1041 }
 0x8af   :  { %v997_v9 = vpop.permute.xlu1 %996 }
 0x8b0   :  { %v999_v11 = vadd.f32 %v997_v9, %v2323_v38 }
 0x8b2   :  { %v1719_v13 = vmul.f32 -1.442695, %v999_v11 }
 0x8b4   :  { %1848 = vpow2.f32 %v1719_v13 }
 0x8b7   :  { %v1050_v4 = vpop.permute.xlu1 %1049 }
 0x8ba   :  { %v1849_v14 = vpop.eup %1848 }
 0x8bb   :  { %v1003_v17 = vadd.f32 1.0, %v1849_v14 }
 0x8bd   :  { %1850 = vrcp.f32 %v1003_v17  ;;  %v1015_v3 = vand.u32 2147483648, %v1003_v17  ;;  %vm1009_vm3 = vweird.f32 %v1003_v17  ;;  %v1013_v7 = vand.u32 2147483647, %v1003_v17 }
 0x8be   :  { %1852 = vpow2.f32 %v1720_v25 }
 0x8bf   :  { %v1016_v45 = vor.u32 1.1754944e-38, %v1015_v3  ;;  %vm1014_vm5 = vcmp.eq.f32.partialorder %v1013_v7, 8.507059e+37 }
 0x8c3   :  { %v1851_v19 = vpop.eup %1850 }
 0x8c4   :  { %v1853_v21 = vpop.eup %1852  ;;  %v1005_v26 = vmul.f32 %v1851_v19, %v1003_v17  ;;  %vm1010_vm2 = vweird.f32 %v1851_v19 }
 0x8c5   :  { %v1023_v28 = vadd.f32 1.0, %v1853_v21  ;;  %vm1011_vm4 = vmor %vm1009_vm3, %vm1010_vm2 }
 0x8c6   :  { %v1006_v31 = vsub.f32 1.0, %v1005_v26 }
 0x8c7   :  { %vm1029_vm0 = vweird.f32 %v1023_v28  ;;  %v1035_v56 = vand.u32 2147483648, %v1023_v28  ;;  %v1033_v20 = vand.u32 2147483647, %v1023_v28 }
 0x8c8   :  { %v1007_v35 = vmul.f32 %v1851_v19, %v1006_v31 }
 0x8c9   :  { %v1036_v34 = vor.u32 1.1754944e-38, %v1035_v56  ;;  %vm1034_vm13 = vcmp.eq.f32.partialorder %v1033_v20, 8.507059e+37 }
 0x8ca   :  { %v1008_v39 = vadd.f32 %v1851_v19, %v1007_v35 }
 0x8cc   :  { %v1012_v44 = vsel %vm1011_vm4, %v1851_v19, %v1008_v39 }
 0x8cd   :  { %v1017_v47 = vsel %vm1014_vm5, %v1016_v45, %v1012_v44 }
 0x8ce   :  { %v1044_v51 = vmul.f32 %v1042_v48, %v1017_v47 }
 0x8d0   :  { %v1045_v54 = vadd.f32 %v1044_v51, %v2334_v2 }
 0x8f1   :  { %v931_v8 = vpop.f32.mrf.mxu2 }
 0x8f2   :  { %v2352_v24 = vadd.f32 %v931_v8, %v2183_v27 }
 0x8f4   :  { %954 = vrot.lane.b32.xlu0 %v2352_v24, %s2025_s30  ;;  %v1717_v18 = vmul.f32 -1.442695, %v2352_v24 }
 0x8f6   :  { %1854 = vpow2.f32 %v1717_v18 }
 0x8f7   :  { %1856 = vrcp.f32 %v1023_v28 }
 0x8fc   :  { %v1855_v22 = vpop.eup %1854 }
 0x8fd   :  { %v937_v29 = vadd.f32 1.0, %v1855_v22  ;;  %v1857_v6 = vpop.eup %1856 }
 0x8fe   :  { %v1025_v12 = vmul.f32 %v1857_v6, %v1023_v28  ;;  %vm1030_vm6 = vweird.f32 %v1857_v6 }
 0x8ff   :  { %1858 = vrcp.f32 %v937_v29  ;;  %v949_v10 = vand.u32 2147483648, %v937_v29  ;;  %vm1031_vm8 = vmor %vm1029_vm0, %vm1030_vm6  ;;  %vm943_vm11 = vweird.f32 %v937_v29  ;;  %v947_v23 = vand.u32 2147483647, %v937_v29 }
 0x900   :  { %v1026_v49 = vsub.f32 1.0, %v1025_v12  ;;  %1860 = vtanh.f32 %v1045_v54 }
 0x901   :  { %v950_v37 = vor.u32 1.1754944e-38, %v949_v10  ;;  %vm948_vm14 = vcmp.eq.f32.partialorder %v947_v23, 8.507059e+37 }
 0x902   :  { %v1027_v52 = vmul.f32 %v1857_v6, %v1026_v49 }
 0x904   :  { %v1028_v30 = vadd.f32 %v1857_v6, %v1027_v52 }
 0x905   :  { %v1859_v0 = vpop.eup %1858 }
 0x906   :  { %v939_v42 = vmul.f32 %v1859_v0, %v937_v29  ;;  %vm944_vm7 = vweird.f32 %v1859_v0  ;;  %v1032_v59 = vsel %vm1031_vm8, %v1857_v6, %v1028_v30  ;;  %v1861_v63 = vpop.eup %1860 }
 0x907   :  { %vm945_vm12 = vmor %vm943_vm11, %vm944_vm7  ;;  %v1037_v62 = vsel %vm1034_vm13, %v1036_v34, %v1032_v59 }
 0x908   :  { %v940_v50 = vsub.f32 1.0, %v939_v42  ;;  %v1047_v61 = vsub.f32 1.0, %v1037_v62  ;;  %v1052_v5 = vmul.f32 %v1050_v4, %v1037_v62 }
 0x90a   :  { %v941_v53 = vmul.f32 %v1859_v0, %v940_v50  ;;  %v1048_v41 = vmul.f32 %v1861_v63, %v1047_v61 }
 0x90c   :  { %v942_v55 = vadd.f32 %v1859_v0, %v941_v53  ;;  %v1053_v32 = vadd.f32 %v1052_v5, %v1048_v41 }
 0x90e   :  { %v946_v33 = vsel %vm945_vm12, %v1859_v0, %v942_v55 }
 0x90f   :  { %v951_v43 = vsel %vm948_vm14, %v950_v37, %v946_v33 }
 0x910   :  { %v964_v14 = vsub.f32 1.0, %v951_v43  ;;  %v970_v17 = vmul.f32 %v951_v43, %v2346_v60 }
 0x966   :  { %v955_v40 = vpop.permute.xlu0 %954 }
 0x967   :  { %v957_v46 = vmul.f32 %v955_v40, %v951_v43 }
 0x969   :  { %959 = vrot.lane.b32.xlu0 %v957_v46, %s2022_s0 }
 0x971   :  { %1055 = vrot.lane.b32.xlu0 %v1053_v32, %s2024_s2 }
 0x9db   :  { %v960_v8 = vpop.permute.xlu0 %959 }
 0x9dc   :  { %v962_v9 = vadd.f32 %v960_v8, %v2352_v24 }
 0x9de   :  { %1862 = vtanh.f32 %v962_v9 }
 0x9e3   :  { %v1056_v11 = vpop.permute.xlu0 %1055 }
 0x9e4   :  { %v1863_v13 = vpop.eup %1862  ;;  %1723 = vmatmul.msk.f32.vlgmr.msra.gmra.mxu3 %vm239_vm9, %v1056_v11 }
 0x9e5   :  { %966 = vrot.lane.b32.xlu2 %v1863_v13, %s2024_s2 }
 0xa3f   :  { %v967_v16 = vpop.permute.xlu2 %966 }
 0xa40   :  { %v969_v25 = vmul.f32 %v967_v16, %v964_v14 }
 0xa42   :  { %v2366_v18 = vadd.f32 %v970_v17, %v969_v25 }
 0xa44   :  { %v1058_v19 = vsel %vm239_vm9, %v1056_v11, %v2366_v18 }
 0xa45   :  { %1721 = vmatmul.msk.f32.vlgmr.msrb.gmra.mxu1 %vm326_vm10, %v1058_v19 }
 0xa67   :  { %v1139_v24 = vpop.f32.mrf.mxu3 }
 0xa68   :  { %1166 = vrot.lane.b32.xlu0 %v1139_v24, %s2025_s30  ;;  %1143 = vrot.lane.b32.xlu2 %v1139_v24, %s2022_s0  ;;  %v1189_v34 = vadd.f32 %v1139_v24, %v2096_v15 }
 0xa70   :  { %1195 = vrot.lane.b32.xlu2 %v1053_v32, %s2025_s30 }
 0xac2   :  { %v1079_v21 = vpop.f32.mrf.mxu1  ;;  %v1144_v26 = vpop.permute.xlu2 %1143 }
 0xac3   :  { %v2375_v22 = vadd.f32 %v1079_v21, %v2183_v27  ;;  %v1146_v28 = vadd.f32 %v1144_v26, %v2323_v38 }
 0xac5   :  { %1102 = vrot.lane.b32.xlu1 %v2375_v22, %s2025_s30  ;;  %v1724_v29 = vmul.f32 -1.442695, %v1146_v28  ;;  %v1722_v39 = vmul.f32 -1.442695, %v2375_v22 }
 0xac7   :  { %1864 = vpow2.f32 %v1724_v29 }
 0xaca   :  { %v1196_v24 = vpop.permute.xlu2 %1195 }
 0xacd   :  { %v1865_v6 = vpop.eup %1864 }
 0xace   :  { %v1150_v3 = vadd.f32 1.0, %v1865_v6 }
 0xad0   :  { %v1162_v54 = vand.u32 2147483648, %v1150_v3  ;;  %vm1156_vm1 = vweird.f32 %v1150_v3  ;;  %v1160_v55 = vand.u32 2147483647, %v1150_v3 }
 0xad2   :  { %v1163_v20 = vor.u32 1.1754944e-38, %v1162_v54  ;;  %vm1161_vm3 = vcmp.eq.f32.partialorder %v1160_v55, 8.507059e+37 }
 0xada   :  { %v1167_v31 = vpop.permute.xlu0 %1166 }
 0xadb   :  { %v1169_v35 = vadd.f32 %v1167_v31, %v2328_v1 }
 0xadd   :  { %v1725_v0 = vmul.f32 -1.442695, %v1169_v35 }
 0xadf   :  { %1866 = vpow2.f32 %v1725_v0 }
 0xae0   :  { %1868 = vpow2.f32 %v1722_v39 }
 0xae1   :  { %1870 = vrcp.f32 %v1150_v3 }
 0xae5   :  { %v1867_v7 = vpop.eup %1866 }
 0xae6   :  { %v1869_v12 = vpop.eup %1868  ;;  %v1173_v44 = vadd.f32 1.0, %v1867_v7 }
 0xae7   :  { %v1871_v42 = vpop.eup %1870  ;;  %v1085_v45 = vadd.f32 1.0, %v1869_v12 }
 0xae8   :  { %v1152_v47 = vmul.f32 %v1871_v42, %v1150_v3  ;;  %1872 = vrcp.f32 %v1173_v44  ;;  %vm1157_vm15 = vweird.f32 %v1871_v42  ;;  %v1185_v43 = vand.u32 2147483648, %v1173_v44 }
 0xae9   :  { %1874 = vrcp.f32 %v1085_v45  ;;  %vm1158_vm2 = vmor %vm1156_vm1, %vm1157_vm15  ;;  %vm1179_vm6 = vweird.f32 %v1173_v44  ;;  %v1183_v63 = vand.u32 2147483647, %v1173_v44  ;;  %v1097_v61 = vand.u32 2147483648, %v1085_v45 }
 0xaea   :  { %v1153_v49 = vsub.f32 1.0, %v1152_v47  ;;  %vm1091_vm0 = vweird.f32 %v1085_v45  ;;  %v1095_v41 = vand.u32 2147483647, %v1085_v45  ;;  %v1186_v32 = vor.u32 1.1754944e-38, %v1185_v43 }
 0xaeb   :  { %vm1184_vm11 = vcmp.eq.f32.partialorder %v1183_v63, 8.507059e+37  ;;  %v1098_v9 = vor.u32 1.1754944e-38, %v1097_v61 }
 0xaec   :  { %v1154_v48 = vmul.f32 %v1871_v42, %v1153_v49  ;;  %vm1096_vm12 = vcmp.eq.f32.partialorder %v1095_v41, 8.507059e+37 }
 0xaee   :  { %v1873_v50 = vpop.eup %1872  ;;  %v1155_v53 = vadd.f32 %v1871_v42, %v1154_v48 }
 0xaef   :  { %v1875_v51 = vpop.eup %1874  ;;  %v1175_v52 = vmul.f32 %v1873_v50, %v1173_v44  ;;  %vm1180_vm4 = vweird.f32 %v1873_v50 }
 0xaf0   :  { %v1087_v30 = vmul.f32 %v1875_v51, %v1085_v45  ;;  %v1159_v10 = vsel %vm1158_vm2, %v1871_v42, %v1155_v53  ;;  %vm1092_vm5 = vweird.f32 %v1875_v51  ;;  %vm1181_vm7 = vmor %vm1179_vm6, %vm1180_vm4 }
 0xaf1   :  { %v1176_v56 = vsub.f32 1.0, %v1175_v52  ;;  %v1164_v59 = vsel %vm1161_vm3, %v1163_v20, %v1159_v10  ;;  %vm1093_vm8 = vmor %vm1091_vm0, %vm1092_vm5 }
 0xaf2   :  { %v1088_v23 = vsub.f32 1.0, %v1087_v30  ;;  %v1190_v62 = vmul.f32 %v1189_v34, %v1164_v59 }
 0xaf3   :  { %v1177_v33 = vmul.f32 %v1873_v50, %v1176_v56 }
 0xaf4   :  { %v1089_v37 = vmul.f32 %v1875_v51, %v1088_v23  ;;  %v1191_v4 = vadd.f32 %v1190_v62, %v2334_v2 }
 0xaf5   :  { %v1178_v40 = vadd.f32 %v1873_v50, %v1177_v33 }
 0xaf6   :  { %v1090_v46 = vadd.f32 %v1875_v51, %v1089_v37  ;;  %1876 = vtanh.f32 %v1191_v4 }
 0xaf7   :  { %v1182_v5 = vsel %vm1181_vm7, %v1873_v50, %v1178_v40 }
 0xaf8   :  { %v1094_v8 = vsel %vm1093_vm8, %v1875_v51, %v1090_v46  ;;  %v1187_v11 = vsel %vm1184_vm11, %v1186_v32, %v1182_v5  ;;  %vm1434_vm11 = vcmask 1041408  }
 0xaf9   :  { %v1099_v14 = vsel %vm1096_vm12, %v1098_v9, %v1094_v8  ;;  %v1193_v17 = vsub.f32 1.0, %v1187_v11  ;;  %v1198_v21 = vmul.f32 %v1196_v24, %v1187_v11  ;;  %vm1436_vm12 = vcmask 1043456  }
 0xafa   :  { %v1112_v6 = vsub.f32 1.0, %v1099_v14  ;;  %v1118_v39 = vmul.f32 %v1099_v14, %v2366_v18 }
 0xafc   :  { %v1877_v25 = vpop.eup %1876 }
 0xafd   :  { %v1194_v19 = vmul.f32 %v1877_v25, %v1193_v17 }
 0xaff   :  { %v1199_v26 = vadd.f32 %v1198_v21, %v1194_v19 }
 0xb37   :  { %v1103_v13 = vpop.permute.xlu1 %1102 }
 0xb38   :  { %v1105_v16 = vmul.f32 %v1103_v13, %v1099_v14 }
 0xb3a   :  { %1107 = vrot.lane.b32.xlu1 %v1105_v16, %s2022_s0 }
 0xb42   :  { %1201 = vrot.lane.b32.xlu1 %v1199_v26, %s2022_s0 }
 0xbac   :  { %v1108_v28 = vpop.permute.xlu1 %1107 }
 0xbad   :  { %v1110_v29 = vadd.f32 %v1108_v28, %v2375_v22 }
 0xbaf   :  { %1878 = vtanh.f32 %v1110_v29 }
 0xbb4   :  { %v1202_v31 = vpop.permute.xlu1 %1201 }
 0xbb5   :  { %v1879_v35 = vpop.eup %1878  ;;  %1728 = vmatmul.msk.f32.vlgmr.msrb.gmra.mxu2 %vm239_vm9, %v1202_v31 }
 0xbb6   :  { %1114 = vrot.lane.b32.xlu0 %v1879_v35, %s2024_s2 }
 0xc28   :  { %v1115_v0 = vpop.permute.xlu0 %1114 }
 0xc29   :  { %v1117_v3 = vmul.f32 %v1115_v0, %v1112_v6 }
 0xc2b   :  { %v2390_v7 = vadd.f32 %v1118_v39, %v1117_v3 }
 0xc2d   :  { %v1204_v12 = vsel %vm239_vm9, %v1202_v31, %v2390_v7 }
 0xc2e   :  { %1726 = vmatmul.msk.f32.vlgmr.msrb.gmra.mxu0 %vm326_vm10, %v1204_v12 }
 0xc38   :  { %v1285_v22 = vpop.f32.mrf.mxu2 }
 0xc39   :  { %1312 = vrot.lane.b32.xlu1 %v1285_v22, %s2022_s0  ;;  %1289 = vrot.lane.b32.xlu0 %v1285_v22, %s2024_s2  ;;  %v1335_v45 = vadd.f32 %v1285_v22, %v2096_v15 }
 0xc41   :  { %1345 = vrot.lane.b32.xlu1 %v1199_v26, %s2025_s30 }
 0xcab   :  { %v1225_v42 = vpop.f32.mrf.mxu0  ;;  %v1290_v49 = vpop.permute.xlu0 %1289 }
 0xcac   :  { %v2399_v44 = vadd.f32 %v1225_v42, %v2183_v27  ;;  %v1292_v50 = vadd.f32 %v1290_v49, %v2323_v38  ;;  %v1313_v48 = vpop.permute.xlu1 %1312 }
 0xcad   :  { %v1315_v53 = vadd.f32 %v1313_v48, %v2328_v1 }
 0xcae   :  { %1248 = vrot.lane.b32.xlu2 %v2399_v44, %s2025_s30  ;;  %v1727_v47 = vmul.f32 -1.442695, %v2399_v44  ;;  %v1729_v51 = vmul.f32 -1.442695, %v1292_v50 }
 0xcaf   :  { %v1730_v30 = vmul.f32 -1.442695, %v1315_v53 }
 0xcb0   :  { %1880 = vpow2.f32 %v1727_v47 }
 0xcb1   :  { %1882 = vpow2.f32 %v1729_v51 }
 0xcb4   :  { %v1346_v3 = vpop.permute.xlu1 %1345 }
 0xcb6   :  { %1337 = vrot.lane.b32.xlu2 %v1335_v45, %s2025_s30  ;;  %v1881_v52 = vpop.eup %1880 }
 0xcb7   :  { %v1231_v54 = vadd.f32 1.0, %v1881_v52  ;;  %v1883_v55 = vpop.eup %1882 }
 0xcb8   :  { %v1296_v15 = vadd.f32 1.0, %v1883_v55  ;;  %v1417_v55 = vrot.slane %v2262_v36, 6 }
 0xcb9   :  { %1884 = vrcp.f32 %v1231_v54  ;;  %v1243_v40 = vand.u32 2147483648, %v1231_v54  ;;  %vm1237_vm14 = vweird.f32 %v1231_v54  ;;  %v1241_v43 = vand.u32 2147483647, %v1231_v54 }
 0xcba   :  { %1886 = vpow2.f32 %v1730_v30  ;;  %v1308_v11 = vand.u32 2147483648, %v1296_v15  ;;  %vm1302_vm3 = vweird.f32 %v1296_v15  ;;  %v1306_v13 = vand.u32 2147483647, %v1296_v15 }
 0xcbb   :  { %1888 = vrcp.f32 %v1296_v15  ;;  %v1244_v4 = vor.u32 1.1754944e-38, %v1243_v40  ;;  %vm1242_vm1 = vcmp.eq.f32.partialorder %v1241_v43, 8.507059e+37 }
 0xcbc   :  { %v1309_v17 = vor.u32 1.1754944e-38, %v1308_v11  ;;  %vm1307_vm5 = vcmp.eq.f32.partialorder %v1306_v13, 8.507059e+37  ;;  %v2444_v11 = vld [vmem:[#allocation7 + $0x60] sm:$0xff] }
 0xcbd   :  { %v1443_v13 = vperm.slane %v2444_v11, 2 }
 0xcbf   :  { %v1885_v56 = vpop.eup %1884 }
 0xcc0   :  { %v1887_v10 = vpop.eup %1886  ;;  %v1233_v20 = vmul.f32 %v1885_v56, %v1231_v54  ;;  %vm1238_vm13 = vweird.f32 %v1885_v56 }
 0xcc1   :  { %v1319_v23 = vadd.f32 1.0, %v1887_v10  ;;  %v1889_v38 = vpop.eup %1888  ;;  %vm1239_vm15 = vmor %vm1237_vm14, %vm1238_vm13  ;;  %vm1438_vm13 = vcmask 1045504   ;;  %v1435_v10 = vsel %vm1434_vm11, %v2224_v58, %v1417_v55  ;;  %v2437_v58 = vld [vmem:[#allocation7 + $0x68] sm:$0xff] }
 0xcc2   :  { %v1234_v59 = vsub.f32 1.0, %v1233_v20  ;;  %v1298_v34 = vmul.f32 %v1889_v38, %v1296_v15  ;;  %vm1303_vm2 = vweird.f32 %v1889_v38  ;;  %v1420_v15 = vrot.slane %v2298_v57, 4  ;;  %v2432_v57 = vld [vmem:[#allocation7 + $0x78] sm:$0xff] }
 0xcc3   :  { %1890 = vrcp.f32 %v1319_v23  ;;  %vm1304_vm4 = vmor %vm1302_vm3, %vm1303_vm2  ;;  %v1331_v21 = vand.u32 2147483648, %v1319_v23  ;;  %vm1325_vm7 = vweird.f32 %v1319_v23  ;;  %v1329_v28 = vand.u32 2147483647, %v1319_v23 }
 0xcc4   :  { %v1235_v33 = vmul.f32 %v1885_v56, %v1234_v59  ;;  %v1299_v1 = vsub.f32 1.0, %v1298_v34  ;;  %v1437_v20 = vsel %vm1436_vm12, %v1435_v10, %v1420_v15 }
 0xcc5   :  { %v1332_v35 = vor.u32 1.1754944e-38, %v1331_v21  ;;  %vm1330_vm8 = vcmp.eq.f32.partialorder %v1329_v28, 8.507059e+37 }
 0xcc6   :  { %v1236_v62 = vadd.f32 %v1885_v56, %v1235_v33  ;;  %v1300_v61 = vmul.f32 %v1889_v38, %v1299_v1 }
 0xcc8   :  { %v1240_v63 = vsel %vm1239_vm15, %v1885_v56, %v1236_v62  ;;  %v1301_v9 = vadd.f32 %v1889_v38, %v1300_v61  ;;  %v1423_v56 = vrot.slane %v2346_v60, 2  ;;  %v2434_v60 = vld [vmem:[#allocation7 + $0x70] sm:$0xff] }
 0xcc9   :  { %v1891_v37 = vpop.eup %1890  ;;  %v1245_v32 = vsel %vm1242_vm1, %v1244_v4, %v1240_v63 }
 0xcca   :  { %v1321_v46 = vmul.f32 %v1891_v37, %v1319_v23  ;;  %v1305_v16 = vsel %vm1304_vm4, %v1889_v38, %v1301_v9  ;;  %vm1326_vm6 = vweird.f32 %v1891_v37  ;;  %v1264_v48 = vmul.f32 %v1245_v32, %v2390_v7  ;;  %v2429_v38 = vld [vmem:[#allocation7 + $0x80] sm:$0xff] }
 0xccb   :  { %v1310_v19 = vsel %vm1307_vm5, %v1309_v17, %v1305_v16  ;;  %vm1327_vm0 = vmor %vm1325_vm7, %vm1326_vm6  ;;  %v1439_v23 = vsel %vm1438_vm13, %v1437_v20, %v1423_v56  ;;  %1466 = vmatpush.msra.mxu1 %v2429_v38  ;;  %v1754_v10 = vpack.i.bf16 %v2432_v57, %v2429_v38 }
 0xccc   :  { %v1322_v41 = vsub.f32 1.0, %v1321_v46 }
 0xccd   :  { %1467 = vmatpush.msra.mxu1 %v2432_v57 }
 0xcce   :  { %v1323_v14 = vmul.f32 %v1891_v37, %v1322_v41 }
 0xccf   :  { %1468 = vmatpush.msra.mxu1 %v2434_v60 }
 0xcd0   :  { %v1324_v25 = vadd.f32 %v1891_v37, %v1323_v14 }
 0xcd1   :  { %1469 = vmatpush.msra.mxu1 %v2437_v58 }
 0xcd2   :  { %v1328_v31 = vsel %vm1327_vm0, %v1891_v37, %v1324_v25 }
 0xcd3   :  { %v1333_v6 = vsel %vm1330_vm8, %v1332_v35, %v1328_v31 }
 0xcd4   :  { %v1343_v0 = vsub.f32 1.0, %v1333_v6  ;;  %v1348_v12 = vmul.f32 %v1346_v3, %v1333_v6 }
 0xd08   :  { %v1249_v5 = vpop.permute.xlu2 %1248 }
 0xd09   :  { %v1251_v8 = vmul.f32 %v1249_v5, %v1245_v32 }
 0xd0b   :  { %1253 = vrot.lane.b32.xlu0 %v1251_v8, %s2022_s0 }
 0xd10   :  { %v1338_v24 = vpop.permute.xlu2 %1337 }
 0xd11   :  { %v1340_v26 = vmul.f32 %v1338_v24, %v1310_v19  ;;  %v1426_v24 = vrot.slane %v2390_v7, 6 }
 0xd13   :  { %v1341_v29 = vadd.f32 %v1340_v26, %v2334_v2  ;;  %v1258_v2 = vsub.f32 1.0, %v1245_v32  ;;  %v1440_v35 = vsel %vm1434_vm11, %v2366_v18, %v1426_v24 }
 0xd15   :  { %1892 = vtanh.f32 %v1341_v29 }
 0xd1b   :  { %v1893_v39 = vpop.eup %1892 }
 0xd1c   :  { %v1344_v22 = vmul.f32 %v1893_v39, %v1343_v0  ;;  %v2026_v39 = vmov 32.0  }
 0xd1e   :  { %v1349_v42 = vadd.f32 %v1348_v12, %v1344_v22 }
 0xd20   :  { %1351 = vrot.lane.b32.xlu0 %v1349_v42, %s2025_s30 }
 0xd7d   :  { %v1254_v45 = vpop.permute.xlu0 %1253 }
 0xd7e   :  { %v1256_v47 = vadd.f32 %v1254_v45, %v2399_v44 }
 0xd80   :  { %1894 = vtanh.f32 %v1256_v47 }
 0xd86   :  { %v1895_v49 = vpop.eup %1894 }
 0xd87   :  { %1260 = vrot.lane.b32.xlu2 %v1895_v49, %s2024_s2 }
 0xd92   :  { %v1352_v53 = vpop.permute.xlu0 %1351 }
 0xde1   :  { %v1261_v50 = vpop.permute.xlu2 %1260 }
 0xde2   :  { %v1263_v51 = vmul.f32 %v1261_v50, %v1258_v2 }
 0xde4   :  { %v2414_v52 = vadd.f32 %v1264_v48, %v1263_v51 }
 0xde6   :  { %v1354_v54 = vsel %vm239_vm9, %v1352_v53, %v2414_v52  ;;  %v1429_v28 = vrot.slane %v2414_v52, 4 }
 0xde7   :  { %1731 = vmatmul.msk.f32.vlgmr.msrb.gmra.mxu3 %vm326_vm10, %v1354_v54  ;;  %v1759_v54 = vpack.i.bf16 %v2437_v58, %v2434_v60 }
 0xde8   :  { %v1441_v6 = vsel %vm1436_vm12, %v1440_v35, %v1429_v28 }
 0xe6a   :  { %v1375_v30 = vpop.f32.mrf.mxu3 }
 0xe6b   :  { %v1376_v44 = vadd.f32 %v1375_v30, %v2183_v27 }
 0xe6d   :  { %1398 = vrot.lane.b32.xlu1 %v1376_v44, %s2025_s30  ;;  %v1732_v27 = vmul.f32 -1.442695, %v1376_v44 }
 0xe6f   :  { %1896 = vpow2.f32 %v1732_v27 }
 0xe75   :  { %1446 = vrot.lane.b32.xlu1 %v1439_v23, %s2024_s2  ;;  %v1897_v59 = vpop.eup %1896 }
 0xe76   :  { %v1381_v36 = vadd.f32 1.0, %v1897_v59 }
 0xe78   :  { %1898 = vrcp.f32 %v1381_v36  ;;  %v1393_v40 = vand.u32 2147483648, %v1381_v36  ;;  %vm1387_vm15 = vweird.f32 %v1381_v36  ;;  %v1391_v43 = vand.u32 2147483647, %v1381_v36 }
 0xe7a   :  { %v1394_v63 = vor.u32 1.1754944e-38, %v1393_v40  ;;  %vm1392_vm2 = vcmp.eq.f32.partialorder %v1391_v43, 8.507059e+37 }
 0xe7e   :  { %v1899_v33 = vpop.eup %1898 }
 0xe7f   :  { %v1383_v34 = vmul.f32 %v1899_v33, %v1381_v36  ;;  %vm1388_vm14 = vweird.f32 %v1899_v33 }
 0xe80   :  { %vm1389_vm1 = vmor %vm1387_vm15, %vm1388_vm14 }
 0xe81   :  { %v1384_v37 = vsub.f32 1.0, %v1383_v34 }
 0xe83   :  { %v1385_v62 = vmul.f32 %v1899_v33, %v1384_v37 }
 0xe85   :  { %v1386_v1 = vadd.f32 %v1899_v33, %v1385_v62 }
 0xe87   :  { %v1390_v46 = vsel %vm1389_vm1, %v1899_v33, %v1386_v1 }
 0xe88   :  { %v1395_v4 = vsel %vm1392_vm2, %v1394_v63, %v1390_v46 }
 0xe89   :  { %v1408_v25 = vsub.f32 1.0, %v1395_v4  ;;  %v1414_v21 = vmul.f32 %v1395_v4, %v2414_v52 }
 0xedf   :  { %v1399_v61 = vpop.permute.xlu1 %1398 }
 0xee0   :  { %v1401_v41 = vmul.f32 %v1399_v61, %v1395_v4 }
 0xee2   :  { %1403 = vrot.lane.b32.xlu2 %v1401_v41, %s2022_s0 }
 0xee7   :  { %v1447_v5 = vpop.permute.xlu1 %1446 }
 0xee8   :  { %1733 = vmatmul.msk.f32.vlgmr.msra.gmra.mxu1 %vm239_vm9, %v1447_v5 }
 0xf3c   :  { %v1404_v32 = vpop.permute.xlu2 %1403 }
 0xf3d   :  { %v1406_v8 = vadd.f32 %v1404_v32, %v1376_v44 }
 0xf3f   :  { %1900 = vtanh.f32 %v1406_v8 }
 0xf40   :  { %1902 = vrcp.f32 %v2026_v39 }
 0xf45   :  { %v1901_v9 = vpop.eup %1900 }
 0xf46   :  { %1410 = vrot.lane.b32.xlu0 %v1901_v9, %s2024_s2  ;;  %v1903_v3 = vpop.eup %1902 }
 0xf47   :  { %v1484_v7 = vmul.f32 32.0, %v1903_v3  ;;  %vm1488_vm3 = vweird.f32 %v1903_v3 }
 0xf49   :  { %v1485_v12 = vsub.f32 1.0, %v1484_v7  ;;  %v101_v7 = vld [vmem:[#allocation7 + $0xc0] sm:$0xff] }
 0xf4a   :  { %1651 = vmatpush.msrb.mxu1 %v101_v7 }
 0xf4b   :  { %v1486_v22 = vmul.f32 %v1903_v3, %v1485_v12  ;;  %v100_v12 = vld [vmem:[#allocation7 + $0xb8] sm:$0xff] }
 0xf4c   :  { %1652 = vmatpush.msrb.mxu1 %v100_v12 }
 0xf4d   :  { %v1487_v42 = vadd.f32 %v1903_v3, %v1486_v22  ;;  %v1589_v22 = vperm.slane %v2444_v11, 3  ;;  %v96_v11 = vld [vmem:[#allocation7 + $0x98] sm:$0xff] }
 0xf4f   :  { %v1489_v45 = vsel %vm1488_vm3, %v1903_v3, %v1487_v42  ;;  %v99_v42 = vld [vmem:[#allocation7 + $0xb0] sm:$0xff] }
 0xf50   :  { %1653 = vmatpush.msrb.mxu1 %v99_v42 }
 0xf65   :  { %v1471_v14 = vpop.f32.mrf.mxu1 }
 0xf66   :  { %v1472_v16 = vadd.f32 %v1471_v14, %v1443_v13 }
 0xf68   :  { %v1477_v17 = vsel %vm239_vm9, %v1472_v16, 0.0 }
 0xf70   :  { %1478 = vadd.xlane.f32.xlu0 %v1477_v17 }
 0xf84   :  { %1529 = vrot.lane.b32.xlu0 %v1443_v13, %s2022_s0 }
 0xf8c   :  { %1760 = vrot.lane.b32.xlu0 %v1759_v54, %s2024_s2 }
 0xf94   :  { %1770 = vrot.lane.b32.xlu0 %v1759_v54, %s2022_s0 }
 0xfb8   :  { %v1411_v19 = vpop.permute.xlu0 %1410 }
 0xfb9   :  { %v1413_v26 = vmul.f32 %v1411_v19, %v1408_v25 }
 0xfbb   :  { %v1415_v29 = vadd.f32 %v1414_v21, %v1413_v26 }
 0xfbd   :  { %v1432_v31 = vrot.slane %v1415_v29, 2 }
 0xfbf   :  { %v1442_v0 = vsel %vm1438_vm13, %v1441_v6, %v1432_v31 }
 0xfc0   :  { %1448 = vrot.lane.b32.xlu2 %v1442_v0, %s2024_s2 }
 0xfe3   :  { %v1479_v47 = vpop.xlane.xlu0 %1478 }
 0xfe4   :  { %v1490_v49 = vmul.f32 %v1489_v45, %v1479_v47  ;;  %v97_v47 = vld [vmem:[#allocation7 + $0xa0] sm:$0xff] }
 0xfe6   :  { %v1492_v2 = vsub.f32 %v1472_v16, %v1490_v49 }
 0xfe8   :  { %v1494_v50 = vmul.f32 %v1492_v2, %v1492_v2 }
 0xfea   :  { %v1496_v18 = vsel %vm239_vm9, %v1494_v50, 0.0 }
 0xfeb   :  { %1497 = vadd.xlane.f32.xlu2 %v1496_v18 }
 0xff6   :  { %v1530_v38 = vpop.permute.xlu0 %1529 }
 0xffe   :  { %v1761_v4 = vpop.permute.xlu0 %1760 }
 0xfff   :  { %v1762_v8 = vunpack.i.l.bf16 %v1761_v4 }
0x1006   :  { %v1771_v0 = vpop.permute.xlu0 %1770 }
0x1007   :  { %v1772_v39 = vunpack.i.l.bf16 %v1771_v0  ;;  %v1773_v3 = vunpack.i.h.bf16 %v1771_v0 }
0x101a   :  { %v1449_v48 = vpop.permute.xlu2 %1448 }
0x101b   :  { %1734 = vmatmul.msk.f32.gmra.mxu1 %vm239_vm9, %v1449_v48 }
0x105e   :  { %v1498_v20 = vpop.xlane.xlu2 %1497 }
0x105f   :  { %v1502_v23 = vmul.f32 %v1498_v20, %v1489_v45 }
0x1061   :  { %v1504_v27 = vadd.f32 1e-05, %v1502_v23 }
0x1063   :  { %1904 = vrsqrt.f32 %v1504_v27  ;;  %vm1512_vm5 = vweird.f32 %v1504_v27 }
0x1069   :  { %v1905_v59 = vpop.eup %1904 }
0x106a   :  { %v1507_v36 = vmul.f32 %v1905_v59, %v1504_v27  ;;  %vm1513_vm4 = vweird.f32 %v1905_v59 }
0x106b   :  { %vm1514_vm6 = vmor %vm1512_vm5, %vm1513_vm4 }
0x106c   :  { %v1508_v60 = vmul.f32 %v1905_v59, %v1507_v36 }
0x106e   :  { %v1509_v58 = vmul.f32 0.5, %v1508_v60 }
0x1070   :  { %v1510_v33 = vsub.f32 1.5, %v1509_v58 }
0x1072   :  { %v1511_v34 = vmul.f32 %v1905_v59, %v1510_v33 }
0x1074   :  { %v1515_v37 = vsel %vm1514_vm6, %v1905_v59, %v1511_v34 }
0x1075   :  { %v1526_v62 = vmul.f32 %v1515_v37, %v1492_v2 }
0x1077   :  { %v1532_v46 = vmul.f32 %v1530_v38, %v1526_v62 }
0x1098   :  { %v1474_v51 = vpop.f32.mrf.mxu1 }
0x1099   :  { %v1475_v52 = vadd.f32 %v1474_v51, %v1443_v13  ;;  %v95_v51 = vld [vmem:[#allocation7 + $0x90] sm:$0xff] }
0x109b   :  { %v1480_v53 = vsel %vm239_vm9, %v1475_v52, 0.0 }
0x109c   :  { %1481 = vadd.xlane.f32.xlu1 %v1480_v53 }
0x10b5   :  { %1534 = vrot.lane.b32.xlu1 %v1443_v13, %s2025_s30 }
0x10bd   :  { %1765 = vrot.lane.b32.xlu1 %v1754_v10, %s2022_s0 }
0x10c5   :  { %1634 = vrot.lane.b32.xlu1 %v1589_v22, %s2022_s0 }
0x110f   :  { %v1482_v30 = vpop.xlane.xlu1 %1481 }
0x1110   :  { %v1491_v44 = vmul.f32 %v1489_v45, %v1482_v30 }
0x1112   :  { %v1493_v55 = vsub.f32 %v1475_v52, %v1491_v44  ;;  %v94_v52 = vld [vmem:[#allocation7 + $0x88] sm:$0xff] }
0x1114   :  { %v1495_v15 = vmul.f32 %v1493_v55, %v1493_v55 }
0x1116   :  { %v1499_v56 = vsel %vm239_vm9, %v1495_v15, 0.0 }
0x1117   :  { %1500 = vadd.xlane.f32.xlu2 %v1499_v56 }
0x1127   :  { %v1535_v43 = vpop.permute.xlu1 %1534 }
0x1128   :  { %v1537_v63 = vadd.f32 %v1535_v43, %v1532_v46 }
0x112f   :  { %1755 = vrot.lane.b32.xlu2 %v1754_v10, %s2024_s2  ;;  %v1766_v31 = vpop.permute.xlu1 %1765 }
0x1130   :  { %v1768_v35 = vunpack.i.h.bf16 %v1766_v31  ;;  %v1767_v6 = vunpack.i.l.bf16 %v1766_v31 }
0x1132   :  { %1620 = vmatpush.msra.mxu0 %v1767_v6 }
0x1134   :  { %1621 = vmatpush.msra.mxu0 %v1768_v35 }
0x1136   :  { %1622 = vmatpush.msra.mxu0 %v1772_v39 }
0x1137   :  { %1557 = vrot.lane.b32.xlu2 %v1443_v13, %s2024_s2  ;;  %v1763_v13 = vunpack.i.h.bf16 %v1761_v4  ;;  %v1635_v56 = vpop.permute.xlu1 %1634 }
0x1138   :  { %1623 = vmatpush.msra.mxu0 %v1773_v3 }
0x118a   :  { %v1501_v57 = vpop.xlane.xlu2 %1500 }
0x118b   :  { %v1503_v1 = vmul.f32 %v1501_v57, %v1489_v45  ;;  %v98_v45 = vld [vmem:[#allocation7 + $0xa8] sm:$0xff] }
0x118c   :  { %1654 = vmatpush.msrb.mxu1 %v98_v45 }
0x118d   :  { %v1505_v40 = vadd.f32 1e-05, %v1503_v1 }
0x118e   :  { %1655 = vmatpush.msrb.mxu1 %v97_v47 }
0x118f   :  { %1906 = vrsqrt.f32 %v1505_v40  ;;  %vm1522_vm0 = vweird.f32 %v1505_v40 }
0x1190   :  { %1908 = vtanh.f32 %v1537_v63  ;;  %1656 = vmatpush.msrb.mxu1 %v96_v11 }
0x1192   :  { %v1756_v61 = vpop.permute.xlu2 %1755  ;;  %1657 = vmatpush.msrb.mxu1 %v95_v51 }
0x1193   :  { %v1758_v41 = vunpack.i.h.bf16 %v1756_v61  ;;  %v1757_v5 = vunpack.i.l.bf16 %v1756_v61 }
0x1194   :  { %1658 = vmatpush.msrb.mxu1 %v94_v52 }
0x1195   :  { %v1907_v32 = vpop.eup %1906  ;;  %1578 = vmatpush.msra.mxu2 %v1757_v5 }
0x1196   :  { %v1517_v9 = vmul.f32 %v1907_v32, %v1505_v40  ;;  %v1909_v17 = vpop.eup %1908  ;;  %vm1523_vm7 = vweird.f32 %v1907_v32 }
0x1197   :  { %1579 = vmatpush.msra.mxu2 %v1758_v41  ;;  %vm1524_vm8 = vmor %vm1522_vm0, %vm1523_vm7 }
0x1198   :  { %v1518_v14 = vmul.f32 %v1907_v32, %v1517_v9 }
0x1199   :  { %1580 = vmatpush.msra.mxu2 %v1762_v8 }
0x119a   :  { %v1519_v16 = vmul.f32 0.5, %v1518_v14  ;;  %v1558_v49 = vpop.permute.xlu2 %1557 }
0x119b   :  { %1581 = vmatpush.msra.mxu2 %v1763_v13 }
0x119c   :  { %v1520_v25 = vsub.f32 1.5, %v1519_v16  ;;  %1735 = vmatmul.msk.f32.vlgmr.msra.gmra.mxu2 %vm239_vm9, %v1909_v17 }
0x119e   :  { %v1521_v19 = vmul.f32 %v1907_v32, %v1520_v25 }
0x11a0   :  { %v1525_v24 = vsel %vm1524_vm8, %v1907_v32, %v1521_v19 }
0x11a1   :  { %v1527_v21 = vmul.f32 %v1525_v24, %v1493_v55 }
0x11a3   :  { %v1533_v26 = vmul.f32 %v1530_v38, %v1527_v21 }
0x11a5   :  { %v1538_v28 = vadd.f32 %v1535_v43, %v1533_v26 }
0x11a7   :  { %1910 = vtanh.f32 %v1538_v28 }
0x11ad   :  { %v1911_v29 = vpop.eup %1910 }
0x11ae   :  { %1736 = vmatmul.msk.f32.gmra.mxu2 %vm239_vm9, %v1911_v29 }
0x121f   :  { %v1583_v2 = vpop.f32.mrf.mxu2 }
0x1220   :  { %v1584_v50 = vadd.f32 %v1583_v2, %v1558_v49 }
0x1222   :  { %1737 = vmatmul.msk.f32.vlgmr.msra.gmra.mxu0 %vm239_vm9, %v1584_v50 }
0x1231   :  { %v1586_v18 = vpop.f32.mrf.mxu2 }
0x1232   :  { %v1587_v48 = vadd.f32 %v1586_v18, %v1558_v49 }
0x1234   :  { %1738 = vmatmul.msk.f32.gmra.mxu0 %vm239_vm9, %v1587_v48 }
0x129f   :  { %v1625_v53 = vpop.f32.mrf.mxu0 }
0x12a0   :  { %v1626_v54 = vadd.f32 %v1625_v53, %v1589_v22 }
0x12a2   :  { %v1631_v30 = vmax.f32 %v1626_v54, 0.0 }
0x12a4   :  { %1739 = vmatmul.msk.f32.vlgmr.msrb.gmra.mxu1 %vm326_vm10, %v1631_v30 }
0x12b1   :  { %v1628_v44 = vpop.f32.mrf.mxu0 }
0x12b2   :  { %v1629_v55 = vadd.f32 %v1628_v44, %v1589_v22 }
0x12b4   :  { %v1632_v15 = vmax.f32 %v1629_v55, 0.0 }
0x12b6   :  { %1740 = vmatmul.msk.f32.gmra.mxu1 %vm326_vm10, %v1632_v15 }
0x1321   :  { %v1660_v10 = vpop.f32.mrf.mxu1 }
0x1322   :  { %v1661_v20 = vadd.f32 %v1660_v10, %v1635_v56 }
0x1324   :  { %1666 = vst.msk [vmem:[#allocation8] sm:$0xff] %vm239_vm9, %v1661_v20 }
0x1333   :  { %v1663_v23 = vpop.f32.mrf.mxu1 }
0x1334   :  { %v1664_v27 = vadd.f32 %v1663_v23, %v1635_v56 }
0x1336   :  { %1667 = vst.msk [vmem:[#allocation8 + $0x8] sm:$0xff] %vm239_vm9, %v1664_v27 }
0x1337   :  { %1680 = dma.vmem_to_hbm [thread:$0]  %s1673_s5, 256, %s1675_s8, [#allocation4], %s2020_s28, %s2020_s28, %s2021_s29  }
0x1338   :  { %2013 = dma.done.wait [#allocation4], 256  }
0x1339   :  { %2014 = vsyncadd [#allocation4], 4294967040 }
0x133a   :  { %1685 = vsyncpa [#allocation3], 1 }
0x133b   :  { %1686 = vsyncpa [#allocation6], 1 }
0x133c   :  { %1687 = vsyncpa [#allocation4], 1 }

</bundles_post_ra>
